<compile_context>
chip_gen: v7x
topology: tpu7x:2x2x1
jax: 0.10.0
libtpu: 0.0.40
codegen_flags: <defaults>
</compile_context>

<pallas_src>
import math

import jax
import jax.numpy as jnp
from jax.experimental import pallas as pl
from jax.experimental.pallas import tpu as pltpu

# ---------------- tiny synthetic DINOv2 config ----------------
IMG = 16          # image_size
PATCH = 8         # patch_size
CIN = 3           # input channels
D = 32            # hidden_size
HEADS = 2         # num_attention_heads
HEAD_DIM = D // HEADS
MLP = 4 * D       # intermediate_size
LAYERS = 2        # num_hidden_layers
N_PATCH = (IMG // PATCH) ** 2
SEQ = N_PATCH + 1                      # +1 for CLS token
SEQ_PAD = ((SEQ + 7) // 8) * 8         # pad tokens to a sublane multiple
EPS = 1e-6                             # layer_norm_eps in DINOv2


# ---------------- in-kernel helpers ----------------
def _layer_norm(x, g, b):
    mu = jnp.mean(x, axis=-1, keepdims=True)
    var = jnp.mean((x - mu) ** 2, axis=-1, keepdims=True)
    return (x - mu) * jax.lax.rsqrt(var + EPS) * g + b


def _gelu(x):
    # TODO(synk): HF DINOv2 uses exact erf-GELU; tanh approximation used here for robust TPU lowering.
    return jax.nn.gelu(x, approximate=True)


# ---------------- fused tower kernel ----------------
def _build_fused_kernel(batch, sel_start, sel_rows):
    scale = 1.0 / math.sqrt(HEAD_DIM)

    def kernel(patches_ref, pw_ref, pb_ref, cls_ref, pos_ref,
               ln1g_ref, ln1b_ref, wqkv_ref, bqkv_ref, wo_ref, bo_ref,
               ln2g_ref, ln2b_ref, w1_ref, b1_ref, w2_ref, b2_ref,
               lnfg_ref, lnfb_ref,
               feats_ref, hid_ref):
        layer = pl.program_id(0)

        # ---- prologue: patch-embed conv (as matmul) + CLS + pos-emb ----
        @pl.when(layer == 0)
        def _prologue():
            pe = jnp.dot(patches_ref[...], pw_ref[...],
                         preferred_element_type=jnp.float32) + pb_ref[...]   # (B*NP, D)
            pos = pos_ref[...]                                               # (SEQ, D)
            cls_row = cls_ref[...] + pos[0:1, :]                             # (1, D)
            pad = jnp.zeros((SEQ_PAD - SEQ, D), jnp.float32)
            for b in range(batch):
                base = b * SEQ_PAD
                hid_ref[base:base + 1, :] = cls_row
                hid_ref[base + 1:base + SEQ, :] = (
                    pe[b * N_PATCH:(b + 1) * N_PATCH, :] + pos[1:SEQ, :])
                hid_ref[base + SEQ:base + SEQ_PAD, :] = pad

        # ---- one Dinov2Layer (runs every grid step) ----
        x = hid_ref[...]                                           # (B*SEQ_PAD, D)

        h = _layer_norm(x, ln1g_ref[0], ln1b_ref[0])
        qkv = jnp.dot(h, wqkv_ref[0],
                      preferred_element_type=jnp.float32) + bqkv_ref[0]      # (rows, 3D)

        def split_heads(off):
            parts = [
                qkv[:, off + hh * HEAD_DIM: off + (hh + 1) * HEAD_DIM]
                .reshape(batch, SEQ_PAD, HEAD_DIM)
                for hh in range(HEADS)
            ]
            return jnp.concatenate(parts, axis=0)       # (B*HEADS, SEQ_PAD, HEAD_DIM)

        qh = split_heads(0)
        kh = split_heads(D)
        vh = split_heads(2 * D)

        s = jnp.einsum("bqd,bkd->bqk", qh, kh,
                       preferred_element_type=jnp.float32) * scale
        col = jax.lax.broadcasted_iota(jnp.int32, (SEQ_PAD, SEQ_PAD), 1)
        s = jnp.where((col < SEQ)[None, :, :], s, -1e30)   # mask padded key columns
        s = s - jnp.max(s, axis=-1, keepdims=True)
        p = jnp.exp(s)
        p = p * pl.reciprocal(jnp.sum(p, axis=-1, keepdims=True), approx=True)
        ctx = jnp.einsum("bqk,bkd->bqd", p, vh,
                         preferred_element_type=jnp.float32)  # (B*HEADS, SEQ_PAD, HD)
        ctx = jnp.concatenate(
            [ctx[hh * batch:(hh + 1) * batch].reshape(batch * SEQ_PAD, HEAD_DIM)
             for hh in range(HEADS)],
            axis=-1)                                           # (rows, D)

        attn = jnp.dot(ctx, wo_ref[0],
                       preferred_element_type=jnp.float32) + bo_ref[0]  # LayerScale1 pre-folded
        x = x + attn

        h2 = _layer_norm(x, ln2g_ref[0], ln2b_ref[0])
        f = jnp.dot(h2, w1_ref[0], preferred_element_type=jnp.float32) + b1_ref[0]
        f = _gelu(f)
        f = jnp.dot(f, w2_ref[0], preferred_element_type=jnp.float32) + b2_ref[0]  # LayerScale2 pre-folded
        x = x + f

        hid_ref[...] = x

        # ---- epilogue: final LayerNorm + feature_select ----
        @pl.when(layer == LAYERS - 1)
        def _epilogue():
            y = _layer_norm(hid_ref[...], lnfg_ref[...], lnfb_ref[...])
            for b in range(batch):
                feats_ref[b, :, :] = y[b * SEQ_PAD + sel_start:
                                       b * SEQ_PAD + sel_start + sel_rows, :]

    return kernel


# ---------------- parameter initialization (deterministic, synthetic) ----------------
def init_params(key):
    ks = iter(jax.random.split(key, 8 + LAYERS * 8))
    nrm = lambda shape: (0.02 * jax.random.normal(next(ks), shape)).astype(jnp.float32)

    params = {
        "patch_w": nrm((CIN * PATCH * PATCH, D)),   # Conv2d weight flattened in (c,ph,pw) order
        "patch_b": jnp.zeros((1, D), jnp.float32),
        "cls_token": nrm((1, 1, D)),
        "pos_emb": nrm((1, SEQ, D)),
        "ln_g": jnp.ones((1, D), jnp.float32),
        "ln_b": jnp.zeros((1, D), jnp.float32),
        "layers": [],
    }
    for _ in range(LAYERS):
        lp = {
            "ln1_g": jnp.ones((1, D), jnp.float32),
            "ln1_b": jnp.zeros((1, D), jnp.float32),
            "wq": nrm((D, D)), "bq": jnp.zeros((1, D), jnp.float32),
            "wk": nrm((D, D)), "bk": jnp.zeros((1, D), jnp.float32),
            "wv": nrm((D, D)), "bv": jnp.zeros((1, D), jnp.float32),
            "wo": nrm((D, D)), "bo": jnp.zeros((1, D), jnp.float32),
            "ls1": jnp.ones((1, D), jnp.float32),   # layerscale_value = 1.0
            "ln2_g": jnp.ones((1, D), jnp.float32),
            "ln2_b": jnp.zeros((1, D), jnp.float32),
            "w1": nrm((D, MLP)), "b1": jnp.zeros((1, MLP), jnp.float32),
            "w2": nrm((MLP, D)), "b2": jnp.zeros((1, D), jnp.float32),
            "ls2": jnp.ones((1, D), jnp.float32),
        }
        params["layers"].append(lp)
    return params


def prepare_params(params):
    """Fuse QKV, fold LayerScale into wo/bo and w2/b2, stack layers."""
    L = params["layers"]
    stk = lambda xs: jnp.stack(xs, axis=0)
    return {
        "patch_w": params["patch_w"],
        "patch_b": params["patch_b"],
        "cls": params["cls_token"].reshape(1, D),
        "pos": params["pos_emb"].reshape(SEQ, D),
        "ln1_g": stk([lp["ln1_g"] for lp in L]),                                   # (LAYERS,1,D)
        "ln1_b": stk([lp["ln1_b"] for lp in L]),
        "wqkv": stk([jnp.concatenate([lp["wq"], lp["wk"], lp["wv"]], axis=1)
                     for lp in L]),                                                # (LAYERS,D,3D)
        "bqkv": stk([jnp.concatenate([lp["bq"], lp["bk"], lp["bv"]], axis=1)
                     for lp in L]),                                                # (LAYERS,1,3D)
        "wo": stk([lp["wo"] * lp["ls1"] for lp in L]),                             # ls1 folded
        "bo": stk([lp["bo"] * lp["ls1"] for lp in L]),
        "ln2_g": stk([lp["ln2_g"] for lp in L]),
        "ln2_b": stk([lp["ln2_b"] for lp in L]),
        "w1": stk([lp["w1"] for lp in L]),
        "b1": stk([lp["b1"] for lp in L]),
        "w2": stk([lp["w2"] * lp["ls2"] for lp in L]),                             # ls2 folded
        "b2": stk([lp["b2"] * lp["ls2"] for lp in L]),
        "lnf_g": params["ln_g"],
        "lnf_b": params["ln_b"],
    }


# ---------------- wrapper ----------------
def dinov2_vision_tower_forward(images, params, select_feature="patch"):
    """Equivalent of DinoV2VisionTower.forward(images) for a tensor input (NCHW)."""
    in_dtype = images.dtype
    x = images.astype(jnp.float32)                   # .to(self.dtype)
    B = x.shape[0]

    # stride=kernel Conv2d as a flattened-patch matmul (im2col in XLA, matmul in kernel)
    xp = x.reshape(B, CIN, IMG // PATCH, PATCH, IMG // PATCH, PATCH)
    xp = xp.transpose(0, 2, 4, 1, 3, 5).reshape(B * N_PATCH, CIN * PATCH * PATCH)

    pp = prepare_params(params)

    if select_feature == "patch":
        sel_start, sel_rows = 1, N_PATCH
    elif select_feature == "cls_patch":
        sel_start, sel_rows = 0, SEQ
    else:
        raise ValueError(f"Unexpected select feature: {select_feature}")

    kernel = _build_fused_kernel(B, sel_start, sel_rows)

    def const_spec(a):
        zeros = (0,) * a.ndim
        return pl.BlockSpec(a.shape, lambda l: zeros)

    def layer_spec(a):
        tail = (0,) * (a.ndim - 1)
        return pl.BlockSpec((1,) + a.shape[1:], lambda l: (l,) + tail)

    operands = (
        xp, pp["patch_w"], pp["patch_b"], pp["cls"], pp["pos"],
        pp["ln1_g"], pp["ln1_b"], pp["wqkv"], pp["bqkv"], pp["wo"], pp["bo"],
        pp["ln2_g"], pp["ln2_b"], pp["w1"], pp["b1"], pp["w2"], pp["b2"],
        pp["lnf_g"], pp["lnf_b"],
    )
    in_specs = [
        const_spec(xp), const_spec(pp["patch_w"]), const_spec(pp["patch_b"]),
        const_spec(pp["cls"]), const_spec(pp["pos"]),
        layer_spec(pp["ln1_g"]), layer_spec(pp["ln1_b"]),
        layer_spec(pp["wqkv"]), layer_spec(pp["bqkv"]),
        layer_spec(pp["wo"]), layer_spec(pp["bo"]),
        layer_spec(pp["ln2_g"]), layer_spec(pp["ln2_b"]),
        layer_spec(pp["w1"]), layer_spec(pp["b1"]),
        layer_spec(pp["w2"]), layer_spec(pp["b2"]),
        const_spec(pp["lnf_g"]), const_spec(pp["lnf_b"]),
    ]

    feats = pl.pallas_call(
        kernel,
        out_shape=jax.ShapeDtypeStruct((B, sel_rows, D), jnp.float32),
        grid=(LAYERS,),
        in_specs=in_specs,
        out_specs=pl.BlockSpec((B, sel_rows, D), lambda l: (0, 0, 0)),
        scratch_shapes=[pltpu.VMEM((B * SEQ_PAD, D), jnp.float32)],
        compiler_params=pltpu.CompilerParams(
            dimension_semantics=("arbitrary",)),   # layers carry state -> sequential
    )(*operands)

    return feats.astype(in_dtype)                    # .to(images.dtype)


if __name__ == "__main__":
    key = jax.random.PRNGKey(0)
    pkey, xkey = jax.random.split(key)
    params = init_params(pkey)
    images = jax.random.normal(xkey, (2, CIN, IMG, IMG), dtype=jnp.float32)  # NCHW

    fwd = jax.jit(dinov2_vision_tower_forward, static_argnames=("select_feature",))
    feats = fwd(images, params, select_feature="patch")
    feats = jax.block_until_ready(feats)
    assert feats.shape == (2, N_PATCH, D), feats.shape
    assert feats.dtype == images.dtype
    print("KERNEL_OK")
</pallas_src>

<mosaic_0001>
module attributes {stable_mosaic.version = 11 : i64} {
  func.func @kernel(%arg0: i32, %arg1: memref<8x192xf32, #tpu.memory_space<vmem>>, %arg2: memref<192x32xf32, #tpu.memory_space<vmem>>, %arg3: memref<1x32xf32, #tpu.memory_space<vmem>>, %arg4: memref<1x32xf32, #tpu.memory_space<vmem>>, %arg5: memref<5x32xf32, #tpu.memory_space<vmem>>, %arg6: memref<1x1x32xf32, #tpu.memory_space<vmem>>, %arg7: memref<1x1x32xf32, #tpu.memory_space<vmem>>, %arg8: memref<1x32x96xf32, #tpu.memory_space<vmem>>, %arg9: memref<1x1x96xf32, #tpu.memory_space<vmem>>, %arg10: memref<1x32x32xf32, #tpu.memory_space<vmem>>, %arg11: memref<1x1x32xf32, #tpu.memory_space<vmem>>, %arg12: memref<1x1x32xf32, #tpu.memory_space<vmem>>, %arg13: memref<1x1x32xf32, #tpu.memory_space<vmem>>, %arg14: memref<1x32x128xf32, #tpu.memory_space<vmem>>, %arg15: memref<1x1x128xf32, #tpu.memory_space<vmem>>, %arg16: memref<1x128x32xf32, #tpu.memory_space<vmem>>, %arg17: memref<1x1x32xf32, #tpu.memory_space<vmem>>, %arg18: memref<1x32xf32, #tpu.memory_space<vmem>>, %arg19: memref<1x32xf32, #tpu.memory_space<vmem>>, %arg20: memref<2x4x32xf32, #tpu.memory_space<vmem>>, %arg21: memref<16x32xf32, #tpu.memory_space<vmem>>) attributes {dimension_semantics = [#tpu.dimension_semantics<arbitrary>], iteration_bounds = array<i64: 2>, scalar_prefetch = 0 : i64, scratch_operands = 1 : i64, tpu.core_type = #tpu.core_type<tc>, window_params = [{pipeline_mode = #tpu.pipeline_mode<synchronous>, transform_indices = @transform_0, window_bounds = array<i64: 8, 192>}, {pipeline_mode = #tpu.pipeline_mode<synchronous>, transform_indices = @transform_1, window_bounds = array<i64: 192, 32>}, {pipeline_mode = #tpu.pipeline_mode<synchronous>, transform_indices = @transform_2, window_bounds = array<i64: 1, 32>}, {pipeline_mode = #tpu.pipeline_mode<synchronous>, transform_indices = @transform_3, window_bounds = array<i64: 1, 32>}, {pipeline_mode = #tpu.pipeline_mode<synchronous>, transform_indices = @transform_4, window_bounds = array<i64: 5, 32>}, {transform_indices = @transform_5, window_bounds = array<i64: 1, 1, 32>}, {transform_indices = @transform_6, window_bounds = array<i64: 1, 1, 32>}, {transform_indices = @transform_7, window_bounds = array<i64: 1, 32, 96>}, {transform_indices = @transform_8, window_bounds = array<i64: 1, 1, 96>}, {transform_indices = @transform_9, window_bounds = array<i64: 1, 32, 32>}, {transform_indices = @transform_10, window_bounds = array<i64: 1, 1, 32>}, {transform_indices = @transform_11, window_bounds = array<i64: 1, 1, 32>}, {transform_indices = @transform_12, window_bounds = array<i64: 1, 1, 32>}, {transform_indices = @transform_13, window_bounds = array<i64: 1, 32, 128>}, {transform_indices = @transform_14, window_bounds = array<i64: 1, 1, 128>}, {transform_indices = @transform_15, window_bounds = array<i64: 1, 128, 32>}, {transform_indices = @transform_16, window_bounds = array<i64: 1, 1, 32>}, {pipeline_mode = #tpu.pipeline_mode<synchronous>, transform_indices = @transform_17, window_bounds = array<i64: 1, 32>}, {pipeline_mode = #tpu.pipeline_mode<synchronous>, transform_indices = @transform_18, window_bounds = array<i64: 1, 32>}, {pipeline_mode = #tpu.pipeline_mode<synchronous>, transform_indices = @transform_19, window_bounds = array<i64: 2, 4, 32>}]} {
    %c0_i32 = arith.constant 0 : i32
    %0 = arith.cmpi eq, %arg0, %c0_i32 : i32
    %1 = arith.extui %0 : i1 to i32
    %c0_i32_0 = arith.constant 0 : i32
    %2 = arith.cmpi ne, %1, %c0_i32_0 : i32
    scf.if %2 {
      %c0_64 = arith.constant 0 : index
      %c0_65 = arith.constant 0 : index
      %145 = vector.load %arg1[%c0_64, %c0_65] : memref<8x192xf32, #tpu.memory_space<vmem>>, vector<8x192xf32>
      %c0_66 = arith.constant 0 : index
      %c0_67 = arith.constant 0 : index
      %146 = vector.load %arg2[%c0_66, %c0_67] : memref<192x32xf32, #tpu.memory_space<vmem>>, vector<192x32xf32>
      %cst_68 = arith.constant dense<0.000000e+00> : vector<8x32xf32>
      %147 = tpu.matmul %145, %146, %cst_68 {dimension_numbers = #tpu.dot_dimension_numbers<[1], [0], [0], [1], [0, 0, 1, 1], [], []>} : vector<8x192xf32>, vector<192x32xf32>, vector<8x32xf32> -> vector<8x32xf32>
      %c0_69 = arith.constant 0 : index
      %c0_70 = arith.constant 0 : index
      %148 = vector.load %arg3[%c0_69, %c0_70] : memref<1x32xf32, #tpu.memory_space<vmem>>, vector<1x32xf32>
      %149 = vector.broadcast %148 : vector<1x32xf32> to vector<8x32xf32>
      %150 = arith.addf %147, %149 : vector<8x32xf32>
      %c0_71 = arith.constant 0 : index
      %c0_72 = arith.constant 0 : index
      %151 = vector.load %arg5[%c0_71, %c0_72] : memref<5x32xf32, #tpu.memory_space<vmem>>, vector<5x32xf32>
      %c0_73 = arith.constant 0 : index
      %c0_74 = arith.constant 0 : index
      %152 = vector.load %arg4[%c0_73, %c0_74] : memref<1x32xf32, #tpu.memory_space<vmem>>, vector<1x32xf32>
      %153 = vector.extract_strided_slice %151 {offsets = [0, 0], sizes = [1, 32], strides = [1, 1]} : vector<5x32xf32> to vector<1x32xf32>
      %154 = arith.addf %152, %153 : vector<1x32xf32>
      %cst_75 = arith.constant 0.000000e+00 : f32
      %155 = vector.broadcast %cst_75 : f32 to vector<3x32xf32>
      %c0_76 = arith.constant 0 : index
      %c0_77 = arith.constant 0 : index
      %156 = vector.load %arg21[%c0_76, %c0_77] : memref<16x32xf32, #tpu.memory_space<vmem>>, vector<1x32xf32>
      tpu.vector_store %arg21[%c0_76, %c0_77], %154 {strides = array<i32>} : memref<16x32xf32, #tpu.memory_space<vmem>>, vector<1x32xf32>,
      %157 = vector.extract_strided_slice %150 {offsets = [0, 0], sizes = [4, 32], strides = [1, 1]} : vector<8x32xf32> to vector<4x32xf32>
      %158 = vector.extract_strided_slice %151 {offsets = [1, 0], sizes = [4, 32], strides = [1, 1]} : vector<5x32xf32> to vector<4x32xf32>
      %159 = arith.addf %157, %158 : vector<4x32xf32>
      %c1 = arith.constant 1 : index
      %c0_78 = arith.constant 0 : index
      %160 = vector.load %arg21[%c1, %c0_78] : memref<16x32xf32, #tpu.memory_space<vmem>>, vector<4x32xf32>
      tpu.vector_store %arg21[%c1, %c0_78], %159 {strides = array<i32>} : memref<16x32xf32, #tpu.memory_space<vmem>>, vector<4x32xf32>,
      %c5 = arith.constant 5 : index
      %c0_79 = arith.constant 0 : index
      %161 = vector.load %arg21[%c5, %c0_79] : memref<16x32xf32, #tpu.memory_space<vmem>>, vector<3x32xf32>
      tpu.vector_store %arg21[%c5, %c0_79], %155 {strides = array<i32>} : memref<16x32xf32, #tpu.memory_space<vmem>>, vector<3x32xf32>,
      %c8 = arith.constant 8 : index
      %c0_80 = arith.constant 0 : index
      %162 = vector.load %arg21[%c8, %c0_80] : memref<16x32xf32, #tpu.memory_space<vmem>>, vector<1x32xf32>
      tpu.vector_store %arg21[%c8, %c0_80], %154 {strides = array<i32>} : memref<16x32xf32, #tpu.memory_space<vmem>>, vector<1x32xf32>,
      %163 = vector.extract_strided_slice %150 {offsets = [4, 0], sizes = [4, 32], strides = [1, 1]} : vector<8x32xf32> to vector<4x32xf32>
      %164 = vector.extract_strided_slice %151 {offsets = [1, 0], sizes = [4, 32], strides = [1, 1]} : vector<5x32xf32> to vector<4x32xf32>
      %165 = arith.addf %163, %164 : vector<4x32xf32>
      %c9 = arith.constant 9 : index
      %c0_81 = arith.constant 0 : index
      %166 = vector.load %arg21[%c9, %c0_81] : memref<16x32xf32, #tpu.memory_space<vmem>>, vector<4x32xf32>
      tpu.vector_store %arg21[%c9, %c0_81], %165 {strides = array<i32>} : memref<16x32xf32, #tpu.memory_space<vmem>>, vector<4x32xf32>,
      %c13 = arith.constant 13 : index
      %c0_82 = arith.constant 0 : index
      %167 = vector.load %arg21[%c13, %c0_82] : memref<16x32xf32, #tpu.memory_space<vmem>>, vector<3x32xf32>
      tpu.vector_store %arg21[%c13, %c0_82], %155 {strides = array<i32>} : memref<16x32xf32, #tpu.memory_space<vmem>>, vector<3x32xf32>,
    } else {
    }
    %c0 = arith.constant 0 : index
    %c0_1 = arith.constant 0 : index
    %3 = vector.load %arg21[%c0, %c0_1] : memref<16x32xf32, #tpu.memory_space<vmem>>, vector<16x32xf32>
    %c0_2 = arith.constant 0 : index
    %c0_3 = arith.constant 0 : index
    %c0_4 = arith.constant 0 : index
    %4 = vector.load %arg6[%c0_2, %c0_3, %c0_4] : memref<1x1x32xf32, #tpu.memory_space<vmem>>, vector<1x1x32xf32>
    %5 = vector.shape_cast %4 : vector<1x1x32xf32> to vector<1x32xf32>
    %c0_5 = arith.constant 0 : index
    %c0_6 = arith.constant 0 : index
    %c0_7 = arith.constant 0 : index
    %6 = vector.load %arg7[%c0_5, %c0_6, %c0_7] : memref<1x1x32xf32, #tpu.memory_space<vmem>>, vector<1x1x32xf32>
    %7 = vector.shape_cast %6 : vector<1x1x32xf32> to vector<1x32xf32>
    %cst = arith.constant dense<0.000000e+00> : vector<16xf32>
    %8 = vector.multi_reduction <add>, %3, %cst [1] : vector<16x32xf32> to vector<16xf32>
    %9 = vector.shape_cast %8 : vector<16xf32> to vector<16x1xf32>
    %cst_8 = arith.constant 3.200000e+01 : f32
    %10 = vector.broadcast %cst_8 : f32 to vector<16x1xf32>
    %11 = arith.divf %9, %10 : vector<16x1xf32>
    %12 = vector.broadcast %11 : vector<16x1xf32> to vector<16x32xf32>
    %13 = arith.subf %3, %12 : vector<16x32xf32>
    %14 = arith.mulf %13, %13 : vector<16x32xf32>
    %cst_9 = arith.constant dense<0.000000e+00> : vector<16xf32>
    %15 = vector.multi_reduction <add>, %14, %cst_9 [1] : vector<16x32xf32> to vector<16xf32>
    %16 = vector.shape_cast %15 : vector<16xf32> to vector<16x1xf32>
    %cst_10 = arith.constant 3.200000e+01 : f32
    %17 = vector.broadcast %cst_10 : f32 to vector<16x1xf32>
    %18 = arith.divf %16, %17 : vector<16x1xf32>
    %19 = vector.broadcast %11 : vector<16x1xf32> to vector<16x32xf32>
    %20 = arith.subf %3, %19 : vector<16x32xf32>
    %cst_11 = arith.constant 9.99999997E-7 : f32
    %21 = vector.broadcast %cst_11 : f32 to vector<16x1xf32>
    %22 = arith.addf %18, %21 : vector<16x1xf32>
    %23 = math.rsqrt %22 : vector<16x1xf32>
    %24 = vector.broadcast %23 : vector<16x1xf32> to vector<16x32xf32>
    %25 = arith.mulf %20, %24 : vector<16x32xf32>
    %26 = vector.broadcast %5 : vector<1x32xf32> to vector<16x32xf32>
    %27 = arith.mulf %25, %26 : vector<16x32xf32>
    %28 = vector.broadcast %7 : vector<1x32xf32> to vector<16x32xf32>
    %29 = arith.addf %27, %28 : vector<16x32xf32>
    %c0_12 = arith.constant 0 : index
    %c0_13 = arith.constant 0 : index
    %c0_14 = arith.constant 0 : index
    %30 = vector.load %arg8[%c0_12, %c0_13, %c0_14] : memref<1x32x96xf32, #tpu.memory_space<vmem>>, vector<1x32x96xf32>
    %31 = vector.shape_cast %30 : vector<1x32x96xf32> to vector<32x96xf32>
    %cst_15 = arith.constant dense<0.000000e+00> : vector<16x96xf32>
    %32 = tpu.matmul %29, %31, %cst_15 {dimension_numbers = #tpu.dot_dimension_numbers<[1], [0], [0], [1], [0, 0, 1, 1], [], []>} : vector<16x32xf32>, vector<32x96xf32>, vector<16x96xf32> -> vector<16x96xf32>
    %c0_16 = arith.constant 0 : index
    %c0_17 = arith.constant 0 : index
    %c0_18 = arith.constant 0 : index
    %33 = vector.load %arg9[%c0_16, %c0_17, %c0_18] : memref<1x1x96xf32, #tpu.memory_space<vmem>>, vector<1x1x96xf32>
    %34 = vector.shape_cast %33 : vector<1x1x96xf32> to vector<1x96xf32>
    %35 = vector.broadcast %34 : vector<1x96xf32> to vector<16x96xf32>
    %36 = arith.addf %32, %35 : vector<16x96xf32>
    %37 = vector.extract_strided_slice %36 {offsets = [0, 0], sizes = [16, 16], strides = [1, 1]} : vector<16x96xf32> to vector<16x16xf32>
    %38 = vector.shape_cast %37 : vector<16x16xf32> to vector<2x8x16xf32>
    %39 = vector.extract_strided_slice %36 {offsets = [0, 16], sizes = [16, 16], strides = [1, 1]} : vector<16x96xf32> to vector<16x16xf32>
    %40 = vector.shape_cast %39 : vector<16x16xf32> to vector<2x8x16xf32>
    %41 = tpu.concatenate %38, %40 in 0 : vector<2x8x16xf32>, vector<2x8x16xf32> -> vector<4x8x16xf32>
    %42 = vector.extract_strided_slice %36 {offsets = [0, 32], sizes = [16, 16], strides = [1, 1]} : vector<16x96xf32> to vector<16x16xf32>
    %43 = vector.shape_cast %42 : vector<16x16xf32> to vector<2x8x16xf32>
    %44 = vector.extract_strided_slice %36 {offsets = [0, 48], sizes = [16, 16], strides = [1, 1]} : vector<16x96xf32> to vector<16x16xf32>
    %45 = vector.shape_cast %44 : vector<16x16xf32> to vector<2x8x16xf32>
    %46 = tpu.concatenate %43, %45 in 0 : vector<2x8x16xf32>, vector<2x8x16xf32> -> vector<4x8x16xf32>
    %47 = vector.extract_strided_slice %36 {offsets = [0, 64], sizes = [16, 16], strides = [1, 1]} : vector<16x96xf32> to vector<16x16xf32>
    %48 = vector.shape_cast %47 : vector<16x16xf32> to vector<2x8x16xf32>
    %49 = vector.extract_strided_slice %36 {offsets = [0, 80], sizes = [16, 16], strides = [1, 1]} : vector<16x96xf32> to vector<16x16xf32>
    %50 = vector.shape_cast %49 : vector<16x16xf32> to vector<2x8x16xf32>
    %51 = tpu.concatenate %48, %50 in 0 : vector<2x8x16xf32>, vector<2x8x16xf32> -> vector<4x8x16xf32>
    "tpu.trace_start"() <{level = 10 : i32, message = "bqd,bkd->bqk"}> : () -> ()
    %cst_19 = arith.constant dense<0.000000e+00> : vector<4x8x8xf32>
    %52 = tpu.matmul %41, %46, %cst_19 {dimension_numbers = #tpu.dot_dimension_numbers<[2], [2], [1], [1], [0, 0, 0, 1, 1, 1], [0], [0]>} : vector<4x8x16xf32>, vector<4x8x16xf32>, vector<4x8x8xf32> -> vector<4x8x8xf32>
    "tpu.trace_stop"() : () -> ()
    %cst_20 = arith.constant 2.500000e-01 : f32
    %53 = vector.broadcast %cst_20 : f32 to vector<4x8x8xf32>
    %54 = arith.mulf %52, %53 : vector<4x8x8xf32>
    %55 = tpu.iota {dimensions = array<i32: 1>} : vector<8x8xi32>
    %c5_i32 = arith.constant 5 : i32
    %56 = vector.broadcast %c5_i32 : i32 to vector<8x8xi32>
    %57 = arith.cmpi slt, %55, %56 : vector<8x8xi32>
    %58 = vector.shape_cast %57 : vector<8x8xi1> to vector<1x8x8xi1>
    %cst_21 = arith.constant -1.000000e+30 : f32
    %59 = vector.shape_cast %58 : vector<1x8x8xi1> to vector<1x8x8xi1>
    %60 = vector.broadcast %59 : vector<1x8x8xi1> to vector<4x8x8xi1>
    %61 = vector.broadcast %cst_21 : f32 to vector<4x8x8xf32>
    %62 = arith.select %60, %54, %61 : vector<4x8x8xi1>, vector<4x8x8xf32>
    %cst_22 = arith.constant dense<0xFF800000> : vector<4x8xf32>
    %63 = vector.multi_reduction <maximumf>, %62, %cst_22 [2] : vector<4x8x8xf32> to vector<4x8xf32>
    %64 = vector.shape_cast %63 : vector<4x8xf32> to vector<4x8x1xf32>
    %65 = vector.broadcast %64 : vector<4x8x1xf32> to vector<4x8x8xf32>
    %66 = arith.subf %62, %65 : vector<4x8x8xf32>
    %67 = math.exp %66 : vector<4x8x8xf32>
    %cst_23 = arith.constant dense<0.000000e+00> : vector<4x8xf32>
    %68 = vector.multi_reduction <add>, %67, %cst_23 [2] : vector<4x8x8xf32> to vector<4x8xf32>
    %69 = vector.shape_cast %68 : vector<4x8xf32> to vector<4x8x1xf32>
    %70 = tpu.reciprocal %69 {approx = true} : vector<4x8x1xf32> -> vector<4x8x1xf32>
    %71 = vector.broadcast %70 : vector<4x8x1xf32> to vector<4x8x8xf32>
    %72 = arith.mulf %67, %71 : vector<4x8x8xf32>
    "tpu.trace_start"() <{level = 10 : i32, message = "bqk,bkd->bqd"}> : () -> ()
    %cst_24 = arith.constant dense<0.000000e+00> : vector<4x8x16xf32>
    %73 = tpu.matmul %72, %51, %cst_24 {dimension_numbers = #tpu.dot_dimension_numbers<[2], [1], [1], [2], [0, 0, 0, 1, 1, 2], [0], [0]>} : vector<4x8x8xf32>, vector<4x8x16xf32>, vector<4x8x16xf32> -> vector<4x8x16xf32>
    "tpu.trace_stop"() : () -> ()
    %74 = vector.extract_strided_slice %73 {offsets = [0, 0, 0], sizes = [2, 8, 16], strides = [1, 1, 1]} : vector<4x8x16xf32> to vector<2x8x16xf32>
    %75 = vector.shape_cast %74 : vector<2x8x16xf32> to vector<16x16xf32>
    %76 = vector.extract_strided_slice %73 {offsets = [2, 0, 0], sizes = [2, 8, 16], strides = [1, 1, 1]} : vector<4x8x16xf32> to vector<2x8x16xf32>
    %77 = vector.shape_cast %76 : vector<2x8x16xf32> to vector<16x16xf32>
    %78 = tpu.concatenate %75, %77 in 1 : vector<16x16xf32>, vector<16x16xf32> -> vector<16x32xf32>
    %c0_25 = arith.constant 0 : index
    %c0_26 = arith.constant 0 : index
    %c0_27 = arith.constant 0 : index
    %79 = vector.load %arg10[%c0_25, %c0_26, %c0_27] : memref<1x32x32xf32, #tpu.memory_space<vmem>>, vector<1x32x32xf32>
    %80 = vector.shape_cast %79 : vector<1x32x32xf32> to vector<32x32xf32>
    %cst_28 = arith.constant dense<0.000000e+00> : vector<16x32xf32>
    %81 = tpu.matmul %78, %80, %cst_28 {dimension_numbers = #tpu.dot_dimension_numbers<[1], [0], [0], [1], [0, 0, 1, 1], [], []>} : vector<16x32xf32>, vector<32x32xf32>, vector<16x32xf32> -> vector<16x32xf32>
    %c0_29 = arith.constant 0 : index
    %c0_30 = arith.constant 0 : index
    %c0_31 = arith.constant 0 : index
    %82 = vector.load %arg11[%c0_29, %c0_30, %c0_31] : memref<1x1x32xf32, #tpu.memory_space<vmem>>, vector<1x1x32xf32>
    %83 = vector.shape_cast %82 : vector<1x1x32xf32> to vector<1x32xf32>
    %84 = vector.broadcast %83 : vector<1x32xf32> to vector<16x32xf32>
    %85 = arith.addf %81, %84 : vector<16x32xf32>
    %86 = arith.addf %3, %85 : vector<16x32xf32>
    %c0_32 = arith.constant 0 : index
    %c0_33 = arith.constant 0 : index
    %c0_34 = arith.constant 0 : index
    %87 = vector.load %arg12[%c0_32, %c0_33, %c0_34] : memref<1x1x32xf32, #tpu.memory_space<vmem>>, vector<1x1x32xf32>
    %88 = vector.shape_cast %87 : vector<1x1x32xf32> to vector<1x32xf32>
    %c0_35 = arith.constant 0 : index
    %c0_36 = arith.constant 0 : index
    %c0_37 = arith.constant 0 : index
    %89 = vector.load %arg13[%c0_35, %c0_36, %c0_37] : memref<1x1x32xf32, #tpu.memory_space<vmem>>, vector<1x1x32xf32>
    %90 = vector.shape_cast %89 : vector<1x1x32xf32> to vector<1x32xf32>
    %cst_38 = arith.constant dense<0.000000e+00> : vector<16xf32>
    %91 = vector.multi_reduction <add>, %86, %cst_38 [1] : vector<16x32xf32> to vector<16xf32>
    %92 = vector.shape_cast %91 : vector<16xf32> to vector<16x1xf32>
    %cst_39 = arith.constant 3.200000e+01 : f32
    %93 = vector.broadcast %cst_39 : f32 to vector<16x1xf32>
    %94 = arith.divf %92, %93 : vector<16x1xf32>
    %95 = vector.broadcast %94 : vector<16x1xf32> to vector<16x32xf32>
    %96 = arith.subf %86, %95 : vector<16x32xf32>
    %97 = arith.mulf %96, %96 : vector<16x32xf32>
    %cst_40 = arith.constant dense<0.000000e+00> : vector<16xf32>
    %98 = vector.multi_reduction <add>, %97, %cst_40 [1] : vector<16x32xf32> to vector<16xf32>
    %99 = vector.shape_cast %98 : vector<16xf32> to vector<16x1xf32>
    %cst_41 = arith.constant 3.200000e+01 : f32
    %100 = vector.broadcast %cst_41 : f32 to vector<16x1xf32>
    %101 = arith.divf %99, %100 : vector<16x1xf32>
    %102 = vector.broadcast %94 : vector<16x1xf32> to vector<16x32xf32>
    %103 = arith.subf %86, %102 : vector<16x32xf32>
    %cst_42 = arith.constant 9.99999997E-7 : f32
    %104 = vector.broadcast %cst_42 : f32 to vector<16x1xf32>
    %105 = arith.addf %101, %104 : vector<16x1xf32>
    %106 = math.rsqrt %105 : vector<16x1xf32>
    %107 = vector.broadcast %106 : vector<16x1xf32> to vector<16x32xf32>
    %108 = arith.mulf %103, %107 : vector<16x32xf32>
    %109 = vector.broadcast %88 : vector<1x32xf32> to vector<16x32xf32>
    %110 = arith.mulf %108, %109 : vector<16x32xf32>
    %111 = vector.broadcast %90 : vector<1x32xf32> to vector<16x32xf32>
    %112 = arith.addf %110, %111 : vector<16x32xf32>
    %c0_43 = arith.constant 0 : index
    %c0_44 = arith.constant 0 : index
    %c0_45 = arith.constant 0 : index
    %113 = vector.load %arg14[%c0_43, %c0_44, %c0_45] : memref<1x32x128xf32, #tpu.memory_space<vmem>>, vector<1x32x128xf32>
    %114 = vector.shape_cast %113 : vector<1x32x128xf32> to vector<32x128xf32>
    %cst_46 = arith.constant dense<0.000000e+00> : vector<16x128xf32>
    %115 = tpu.matmul %112, %114, %cst_46 {dimension_numbers = #tpu.dot_dimension_numbers<[1], [0], [0], [1], [0, 0, 1, 1], [], []>} : vector<16x32xf32>, vector<32x128xf32>, vector<16x128xf32> -> vector<16x128xf32>
    %c0_47 = arith.constant 0 : index
    %c0_48 = arith.constant 0 : index
    %c0_49 = arith.constant 0 : index
    %116 = vector.load %arg15[%c0_47, %c0_48, %c0_49] : memref<1x1x128xf32, #tpu.memory_space<vmem>>, vector<1x1x128xf32>
    %117 = vector.shape_cast %116 : vector<1x1x128xf32> to vector<1x128xf32>
    %118 = vector.broadcast %117 : vector<1x128xf32> to vector<16x128xf32>
    %119 = arith.addf %115, %118 : vector<16x128xf32>
    %120 = arith.mulf %119, %119 : vector<16x128xf32>
    %121 = arith.mulf %119, %120 : vector<16x128xf32>
    %cst_50 = arith.constant 4.471500e-02 : f32
    %122 = vector.broadcast %cst_50 : f32 to vector<16x128xf32>
    %123 = arith.mulf %122, %121 : vector<16x128xf32>
    %124 = arith.addf %119, %123 : vector<16x128xf32>
    %cst_51 = arith.constant 0.797884583 : f32
    %125 = vector.broadcast %cst_51 : f32 to vector<16x128xf32>
    %126 = arith.mulf %125, %124 : vector<16x128xf32>
    %127 = math.tanh %126 : vector<16x128xf32>
    %cst_52 = arith.constant 1.000000e+00 : f32
    %128 = vector.broadcast %cst_52 : f32 to vector<16x128xf32>
    %129 = arith.addf %128, %127 : vector<16x128xf32>
    %cst_53 = arith.constant 5.000000e-01 : f32
    %130 = vector.broadcast %cst_53 : f32 to vector<16x128xf32>
    %131 = arith.mulf %130, %129 : vector<16x128xf32>
    %132 = arith.mulf %119, %131 : vector<16x128xf32>
    %c0_54 = arith.constant 0 : index
    %c0_55 = arith.constant 0 : index
    %c0_56 = arith.constant 0 : index
    %133 = vector.load %arg16[%c0_54, %c0_55, %c0_56] : memref<1x128x32xf32, #tpu.memory_space<vmem>>, vector<1x128x32xf32>
    %134 = vector.shape_cast %133 : vector<1x128x32xf32> to vector<128x32xf32>
    %cst_57 = arith.constant dense<0.000000e+00> : vector<16x32xf32>
    %135 = tpu.matmul %132, %134, %cst_57 {dimension_numbers = #tpu.dot_dimension_numbers<[1], [0], [0], [1], [0, 0, 1, 1], [], []>} : vector<16x128xf32>, vector<128x32xf32>, vector<16x32xf32> -> vector<16x32xf32>
    %c0_58 = arith.constant 0 : index
    %c0_59 = arith.constant 0 : index
    %c0_60 = arith.constant 0 : index
    %136 = vector.load %arg17[%c0_58, %c0_59, %c0_60] : memref<1x1x32xf32, #tpu.memory_space<vmem>>, vector<1x1x32xf32>
    %137 = vector.shape_cast %136 : vector<1x1x32xf32> to vector<1x32xf32>
    %138 = vector.broadcast %137 : vector<1x32xf32> to vector<16x32xf32>
    %139 = arith.addf %135, %138 : vector<16x32xf32>
    %140 = arith.addf %86, %139 : vector<16x32xf32>
    %c0_61 = arith.constant 0 : index
    %c0_62 = arith.constant 0 : index
    %141 = vector.load %arg21[%c0_61, %c0_62] : memref<16x32xf32, #tpu.memory_space<vmem>>, vector<16x32xf32>
    tpu.vector_store %arg21[%c0_61, %c0_62], %140 {strides = array<i32>} : memref<16x32xf32, #tpu.memory_space<vmem>>, vector<16x32xf32>,
    %c1_i32 = arith.constant 1 : i32
    %142 = arith.cmpi eq, %arg0, %c1_i32 : i32
    %143 = arith.extui %142 : i1 to i32
    %c0_i32_63 = arith.constant 0 : i32
    %144 = arith.cmpi ne, %143, %c0_i32_63 : i32
    scf.if %144 {
      %c0_64 = arith.constant 0 : index
      %c0_65 = arith.constant 0 : index
      %145 = vector.load %arg21[%c0_64, %c0_65] : memref<16x32xf32, #tpu.memory_space<vmem>>, vector<16x32xf32>
      %c0_66 = arith.constant 0 : index
      %c0_67 = arith.constant 0 : index
      %146 = vector.load %arg18[%c0_66, %c0_67] : memref<1x32xf32, #tpu.memory_space<vmem>>, vector<1x32xf32>
      %c0_68 = arith.constant 0 : index
      %c0_69 = arith.constant 0 : index
      %147 = vector.load %arg19[%c0_68, %c0_69] : memref<1x32xf32, #tpu.memory_space<vmem>>, vector<1x32xf32>
      %cst_70 = arith.constant dense<0.000000e+00> : vector<16xf32>
      %148 = vector.multi_reduction <add>, %145, %cst_70 [1] : vector<16x32xf32> to vector<16xf32>
      %149 = vector.shape_cast %148 : vector<16xf32> to vector<16x1xf32>
      %cst_71 = arith.constant 3.200000e+01 : f32
      %150 = vector.broadcast %cst_71 : f32 to vector<16x1xf32>
      %151 = arith.divf %149, %150 : vector<16x1xf32>
      %152 = vector.broadcast %151 : vector<16x1xf32> to vector<16x32xf32>
      %153 = arith.subf %145, %152 : vector<16x32xf32>
      %154 = arith.mulf %153, %153 : vector<16x32xf32>
      %cst_72 = arith.constant dense<0.000000e+00> : vector<16xf32>
      %155 = vector.multi_reduction <add>, %154, %cst_72 [1] : vector<16x32xf32> to vector<16xf32>
      %156 = vector.shape_cast %155 : vector<16xf32> to vector<16x1xf32>
      %cst_73 = arith.constant 3.200000e+01 : f32
      %157 = vector.broadcast %cst_73 : f32 to vector<16x1xf32>
      %158 = arith.divf %156, %157 : vector<16x1xf32>
      %159 = vector.broadcast %151 : vector<16x1xf32> to vector<16x32xf32>
      %160 = arith.subf %145, %159 : vector<16x32xf32>
      %cst_74 = arith.constant 9.99999997E-7 : f32
      %161 = vector.broadcast %cst_74 : f32 to vector<16x1xf32>
      %162 = arith.addf %158, %161 : vector<16x1xf32>
      %163 = math.rsqrt %162 : vector<16x1xf32>
      %164 = vector.broadcast %163 : vector<16x1xf32> to vector<16x32xf32>
      %165 = arith.mulf %160, %164 : vector<16x32xf32>
      %166 = vector.broadcast %146 : vector<1x32xf32> to vector<16x32xf32>
      %167 = arith.mulf %165, %166 : vector<16x32xf32>
      %168 = vector.broadcast %147 : vector<1x32xf32> to vector<16x32xf32>
      %169 = arith.addf %167, %168 : vector<16x32xf32>
      %170 = vector.extract_strided_slice %169 {offsets = [1, 0], sizes = [4, 32], strides = [1, 1]} : vector<16x32xf32> to vector<4x32xf32>
      %c0_75 = arith.constant 0 : index
      %c0_76 = arith.constant 0 : index
      %c0_77 = arith.constant 0 : index
      %171 = vector.load %arg20[%c0_75, %c0_76, %c0_77] : memref<2x4x32xf32, #tpu.memory_space<vmem>>, vector<1x4x32xf32>
      %172 = vector.shape_cast %171 : vector<1x4x32xf32> to vector<4x32xf32>
      %173 = vector.shape_cast %170 : vector<4x32xf32> to vector<1x4x32xf32>
      tpu.vector_store %arg20[%c0_75, %c0_76, %c0_77], %173 {strides = array<i32>} : memref<2x4x32xf32, #tpu.memory_space<vmem>>, vector<1x4x32xf32>,
      %174 = vector.extract_strided_slice %169 {offsets = [9, 0], sizes = [4, 32], strides = [1, 1]} : vector<16x32xf32> to vector<4x32xf32>
      %c1 = arith.constant 1 : index
      %c0_78 = arith.constant 0 : index
      %c0_79 = arith.constant 0 : index
      %175 = vector.load %arg20[%c1, %c0_78, %c0_79] : memref<2x4x32xf32, #tpu.memory_space<vmem>>, vector<1x4x32xf32>
      %176 = vector.shape_cast %175 : vector<1x4x32xf32> to vector<4x32xf32>
      %177 = vector.shape_cast %174 : vector<4x32xf32> to vector<1x4x32xf32>
      tpu.vector_store %arg20[%c1, %c0_78, %c0_79], %177 {strides = array<i32>} : memref<2x4x32xf32, #tpu.memory_space<vmem>>, vector<1x4x32xf32>,
    } else {
    }
    return
  }
  func.func @transform_0(%arg0: i32) -> (i32, i32) {
    %c0_i32 = arith.constant 0 : i32
    %c0_i32_0 = arith.constant 0 : i32
    %c0_i32_1 = arith.constant 0 : i32
    return %c0_i32, %c0_i32_0 : i32, i32
  }
  func.func @transform_1(%arg0: i32) -> (i32, i32) {
    %c0_i32 = arith.constant 0 : i32
    %c0_i32_0 = arith.constant 0 : i32
    %c0_i32_1 = arith.constant 0 : i32
    return %c0_i32, %c0_i32_0 : i32, i32
  }
  func.func @transform_2(%arg0: i32) -> (i32, i32) {
    %c0_i32 = arith.constant 0 : i32
    %c0_i32_0 = arith.constant 0 : i32
    %c0_i32_1 = arith.constant 0 : i32
    return %c0_i32, %c0_i32_0 : i32, i32
  }
  func.func @transform_3(%arg0: i32) -> (i32, i32) {
    %c0_i32 = arith.constant 0 : i32
    %c0_i32_0 = arith.constant 0 : i32
    %c0_i32_1 = arith.constant 0 : i32
    return %c0_i32, %c0_i32_0 : i32, i32
  }
  func.func @transform_4(%arg0: i32) -> (i32, i32) {
    %c0_i32 = arith.constant 0 : i32
    %c0_i32_0 = arith.constant 0 : i32
    %c0_i32_1 = arith.constant 0 : i32
    return %c0_i32, %c0_i32_0 : i32, i32
  }
  func.func @transform_5(%arg0: i32) -> (i32, i32, i32) {
    %c0_i32 = arith.constant 0 : i32
    %c0_i32_0 = arith.constant 0 : i32
    %c0_i32_1 = arith.constant 0 : i32
    return %arg0, %c0_i32, %c0_i32_0 : i32, i32, i32
  }
  func.func @transform_6(%arg0: i32) -> (i32, i32, i32) {
    %c0_i32 = arith.constant 0 : i32
    %c0_i32_0 = arith.constant 0 : i32
    %c0_i32_1 = arith.constant 0 : i32
    return %arg0, %c0_i32, %c0_i32_0 : i32, i32, i32
  }
  func.func @transform_7(%arg0: i32) -> (i32, i32, i32) {
    %c0_i32 = arith.constant 0 : i32
    %c0_i32_0 = arith.constant 0 : i32
    %c0_i32_1 = arith.constant 0 : i32
    return %arg0, %c0_i32, %c0_i32_0 : i32, i32, i32
  }
  func.func @transform_8(%arg0: i32) -> (i32, i32, i32) {
    %c0_i32 = arith.constant 0 : i32
    %c0_i32_0 = arith.constant 0 : i32
    %c0_i32_1 = arith.constant 0 : i32
    return %arg0, %c0_i32, %c0_i32_0 : i32, i32, i32
  }
  func.func @transform_9(%arg0: i32) -> (i32, i32, i32) {
    %c0_i32 = arith.constant 0 : i32
    %c0_i32_0 = arith.constant 0 : i32
    %c0_i32_1 = arith.constant 0 : i32
    return %arg0, %c0_i32, %c0_i32_0 : i32, i32, i32
  }
  func.func @transform_10(%arg0: i32) -> (i32, i32, i32) {
    %c0_i32 = arith.constant 0 : i32
    %c0_i32_0 = arith.constant 0 : i32
    %c0_i32_1 = arith.constant 0 : i32
    return %arg0, %c0_i32, %c0_i32_0 : i32, i32, i32
  }
  func.func @transform_11(%arg0: i32) -> (i32, i32, i32) {
    %c0_i32 = arith.constant 0 : i32
    %c0_i32_0 = arith.constant 0 : i32
    %c0_i32_1 = arith.constant 0 : i32
    return %arg0, %c0_i32, %c0_i32_0 : i32, i32, i32
  }
  func.func @transform_12(%arg0: i32) -> (i32, i32, i32) {
    %c0_i32 = arith.constant 0 : i32
    %c0_i32_0 = arith.constant 0 : i32
    %c0_i32_1 = arith.constant 0 : i32
    return %arg0, %c0_i32, %c0_i32_0 : i32, i32, i32
  }
  func.func @transform_13(%arg0: i32) -> (i32, i32, i32) {
    %c0_i32 = arith.constant 0 : i32
    %c0_i32_0 = arith.constant 0 : i32
    %c0_i32_1 = arith.constant 0 : i32
    return %arg0, %c0_i32, %c0_i32_0 : i32, i32, i32
  }
  func.func @transform_14(%arg0: i32) -> (i32, i32, i32) {
    %c0_i32 = arith.constant 0 : i32
    %c0_i32_0 = arith.constant 0 : i32
    %c0_i32_1 = arith.constant 0 : i32
    return %arg0, %c0_i32, %c0_i32_0 : i32, i32, i32
  }
  func.func @transform_15(%arg0: i32) -> (i32, i32, i32) {
    %c0_i32 = arith.constant 0 : i32
    %c0_i32_0 = arith.constant 0 : i32
    %c0_i32_1 = arith.constant 0 : i32
    return %arg0, %c0_i32, %c0_i32_0 : i32, i32, i32
  }
  func.func @transform_16(%arg0: i32) -> (i32, i32, i32) {
    %c0_i32 = arith.constant 0 : i32
    %c0_i32_0 = arith.constant 0 : i32
    %c0_i32_1 = arith.constant 0 : i32
    return %arg0, %c0_i32, %c0_i32_0 : i32, i32, i32
  }
  func.func @transform_17(%arg0: i32) -> (i32, i32) {
    %c0_i32 = arith.constant 0 : i32
    %c0_i32_0 = arith.constant 0 : i32
    %c0_i32_1 = arith.constant 0 : i32
    return %c0_i32, %c0_i32_0 : i32, i32
  }
  func.func @transform_18(%arg0: i32) -> (i32, i32) {
    %c0_i32 = arith.constant 0 : i32
    %c0_i32_0 = arith.constant 0 : i32
    %c0_i32_1 = arith.constant 0 : i32
    return %c0_i32, %c0_i32_0 : i32, i32
  }
  func.func @transform_19(%arg0: i32) -> (i32, i32, i32) {
    %c0_i32 = arith.constant 0 : i32
    %c0_i32_0 = arith.constant 0 : i32
    %c0_i32_1 = arith.constant 0 : i32
    %c0_i32_2 = arith.constant 0 : i32
    return %c0_i32, %c0_i32_0, %c0_i32_1 : i32, i32, i32
  }
}

</mosaic_0001>

<bundles_post_ra>
// kernel: dinov2_vision_tower_forward.1
= control target key start
LH: loop header
LB: loop body
LE: loop exit
PB: predicated region body
PF: predicated region fallthrough
CT: control target
= control target key end

     0   :  { %s3158_s0 = inlined_call_operand.vmem [shape: f32[8,192], index: 0, kind: input, shape index: {}]   ;;  %s3159_s1 = inlined_call_operand.vmem [shape: f32[192,32], index: 1, kind: input, shape index: {}]   ;;  %s3160_s2 = inlined_call_operand.vmem [shape: f32[1,32], index: 2, kind: input, shape index: {}]   ;;  %s3161_s3 = inlined_call_operand.vmem [shape: f32[1,32], index: 3, kind: input, shape index: {}]   ;;  %s3162_s4 = inlined_call_operand.vmem [shape: f32[5,32], index: 4, kind: input, shape index: {}]   ;;  %s3163_s5 = inlined_call_operand.vmem [shape: f32[2,1,32], index: 5, kind: input, shape index: {}]   ;;  %s3164_s6 = inlined_call_operand.vmem [shape: f32[2,1,32], index: 6, kind: input, shape index: {}]   ;;  %s3165_s7 = inlined_call_operand.vmem [shape: f32[2,32,96], index: 7, kind: input, shape index: {}]   ;;  %s3166_s8 = inlined_call_operand.vmem [shape: f32[2,1,96], index: 8, kind: input, shape index: {}]   ;;  %s3167_s9 = inlined_call_operand.vmem [shape: f32[2,32,32], index: 9, kind: input, shape index: {}]   ;;  %s3168_s10 = inlined_call_operand.vmem [shape: f32[2,1,32], index: 10, kind: input, shape index: {}]   ;;  %s3169_s11 = inlined_call_operand.vmem [shape: f32[2,1,32], index: 11, kind: input, shape index: {}]   ;;  %s3170_s12 = inlined_call_operand.vmem [shape: f32[2,1,32], index: 12, kind: input, shape index: {}]   ;;  %s3171_s13 = inlined_call_operand.vmem [shape: f32[2,32,128], index: 13, kind: input, shape index: {}]   ;;  %s3172_s14 = inlined_call_operand.vmem [shape: f32[2,1,128], index: 14, kind: input, shape index: {}]   ;;  %s3173_s15 = inlined_call_operand.vmem [shape: f32[2,128,32], index: 15, kind: input, shape index: {}]   ;;  %s3174_s16 = inlined_call_operand.vmem [shape: f32[2,1,32], index: 16, kind: input, shape index: {}]   ;;  %s3175_s17 = inlined_call_operand.vmem [shape: f32[1,32], index: 17, kind: input, shape index: {}]   ;;  %s3176_s18 = inlined_call_operand.vmem [shape: f32[1,32], index: 18, kind: input, shape index: {}]   ;;  %s3177_s19 = inlined_call_operand.hbm [shape: f32[2,4,32], index: 19, kind: output, shape index: {}]  }
   0x1   :  { %3183 = sst [smem:[#allocation8_spill]] %s3158_s0 }
   0x2   :  { %3184 = sst [smem:[#allocation9_spill]] %s3159_s1 }
   0x3   :  { %3185 = sst [smem:[#allocation10_spill]] %s3160_s2 }
   0x4   :  { %3186 = sst [smem:[#allocation11_spill]] %s3161_s3 }
   0x5   :  { %3187 = sst [smem:[#allocation12_spill]] %s3165_s7 }
   0x6   :  { %3188 = sst [smem:[#allocation13_spill]] %s3167_s9 }
   0x7   :  { %3189 = sst [smem:[#allocation14_spill]] %s3175_s17 }
   0x8   :  { %3190 = sst [smem:[#allocation15_spill]] %s3176_s18 }
   0x9   :  { %3191 = sst [smem:[#allocation16_spill]] %s3177_s19 }
   0xa   :  { %24 = vsyncpa [#allocation4], 0  ;;  %s2783_s0 = smov 0  }
   0xb LB: > { %3192 = sst [smem:[#allocation6_spill]] %s2671_s0  ;;  %s2789_s30 = sadd.s32 4294967295, %s2671_s0   ;;  %s2671_s0 = sphi %s2783_s0, %s30_s0  }
   0xc   : > { %p2278_p0 = scmp.ge.s32.totalorder %s2671_s0, 1  ;;  %p627_p1 = scmp.lt.s32.totalorder %s2671_s0, 3 }
   0xe   : > { %p628_p2 = pnand %p2278_p0, %p627_p1 }
  0x10   : > { %631 = sbr.rel (%p628_p2) target bundleno = 3284 (0xcd4), region = 96 }
  0x17   : > { %p717_p3 = scmp.lt.s32.totalorder %s2789_s30, 1  ;;  %s3193_s7 = sld [smem:[#allocation12_spill]] }
  0x18   : > { %s3194_s9 = sld [smem:[#allocation13_spill]]  ;;  %p2287_p4 = scmp.ne.s32.totalorder %s2789_s30, 0 }
  0x19   : > { %s2795_s20 = scalar_select %p717_p3, %s2789_s30, 1 }
  0x1a   : > { %764 = sbr.rel (%p2287_p4) target bundleno = 300 (0x12c), region = 100  ;;  %s3196_s28 = sld [smem:[#allocation9_spill]] (!%p2287_p4)  ;;  %v2673_v3 = vmov (!%p2287_p4), 0.0|0.0   ;;  %vm798_vm0 = vcmask (!%p2287_p4), 523264   ;;  %v872_v39 = vld [vmem:[%s3162_s4] sm:$0x1f] (!%p2287_p4) }
  0x1b   : > { %s2323_s25 = sshll.u32 %s2795_s20, 5  ;;  %s741_s17 = scalar_lea.vmem %s3169_s11, %s2795_s20  ;;  %2487 = vmatprep.subr.bf16.mxu0 (!%p2287_p4), %v2673_v3  ;;  %vm875_vm1 = vcmask (!%p2287_p4), 253952   ;;  %vm883_vm2 = vcmask (!%p2287_p4), 256000   ;;  %v2674_v42 = vmov (!%p2287_p4), 0.0   ;;  %v878_v44 = vrot.slane (!%p2287_p4), %v872_v39, 1 }
  0x1c   : > { %s744_s27 = scalar_lea.vmem %s3170_s12, %s2795_s20  ;;  %s760_s3 = scalar_lea.vmem %s3174_s16, %s2795_s20  ;;  %884 = vst.msk [vmem:[#allocation2 + $0x5] sm:$0x7] (!%p2287_p4), %vm883_vm2, %v2674_v42  ;;  %891 = vst.msk [vmem:[#allocation2 + $0xd] sm:$0x7] (!%p2287_p4), %vm883_vm2, %v2674_v42  ;;  %v886_v45 = vrot.slane (!%p2287_p4), %v872_v39, 5  ;;  %vm881_vm3 = vcmask (!%p2287_p4), 257024  }
  0x1d   : > { %s2813_s21 = scalar_lea.vmem %s3193_s7, %s2323_s25  ;;  %s2835_s7 = scalar_lea.vmem %s3171_s13, %s2323_s25  ;;  %vm889_vm4 = vcmask (!%p2287_p4), 261124  }
  0x1e   : > { %s2818_s19 = scalar_lea.vmem %s3194_s9, %s2323_s25  ;;  %s3197_s18 = sld [smem:[#allocation8_spill]] (!%p2287_p4) }
  0x1f   : > { %3195 = sst [smem:[#allocation7_spill]] %s2818_s19  ;;  %s2326_s19 = sshll.u32 %s2795_s20, 7 }
  0x20   : > { %s2845_s2 = scalar_lea.vmem %s3173_s15, %s2326_s19  ;;  %v767_v0 = vld [vmem:[%s3196_s28] sm:$0xff] (!%p2287_p4)  ;;  %v768_v1 = vld [vmem:[%s3196_s28 + $0x8] sm:$0xff] (!%p2287_p4)  ;;  %v769_v2 = vld [vmem:[%s3196_s28 + $0x10] sm:$0xff] (!%p2287_p4)  ;;  %s3198_s1 = sld [smem:[#allocation11_spill]] (!%p2287_p4) }
  0x21   : > { %v2488_v4 = vpack.c.bf16 %v768_v1, %v767_v0  ;;  %v770_v5 = vld [vmem:[%s3196_s28 + $0x18] sm:$0xff]  ;;  %v771_v7 = vld [vmem:[%s3196_s28 + $0x20] sm:$0xff]  ;;  %v772_v8 = vld [vmem:[%s3196_s28 + $0x28] sm:$0xff]  ;;  %s3199_s24 = sld [smem:[#allocation10_spill]] }
  0x22   : > { %v2491_v6 = vpack.c.bf16 %v770_v5, %v769_v2  ;;  %v2494_v9 = vpack.c.bf16 %v772_v8, %v771_v7  ;;  %v773_v10 = vld [vmem:[%s3196_s28 + $0x30] sm:$0xff]  ;;  %v774_v11 = vld [vmem:[%s3196_s28 + $0x38] sm:$0xff]  ;;  %v775_v14 = vld [vmem:[%s3196_s28 + $0x40] sm:$0xff] }
  0x23   : > { %2489 = vmatpush1.bf16.msra.mxu0 %v2488_v4  ;;  %v2497_v13 = vpack.c.bf16 %v774_v11, %v773_v10  ;;  %v776_v15 = vld [vmem:[%s3196_s28 + $0x48] sm:$0xff]  ;;  %v777_v17 = vld [vmem:[%s3196_s28 + $0x50] sm:$0xff]  ;;  %v778_v18 = vld [vmem:[%s3196_s28 + $0x58] sm:$0xff] }
  0x24   : > { %2490 = vmatprep.subr.bf16.mxu0 %v2673_v3  ;;  %v766_v12 = vld [vmem:[%s3197_s18 + $0x8] sm:$0xff]  ;;  %v2500_v16 = vpack.c.bf16 %v776_v15, %v775_v14  ;;  %v2503_v19 = vpack.c.bf16 %v778_v18, %v777_v17  ;;  %v779_v20 = vld [vmem:[%s3196_s28 + $0x60] sm:$0xff]  ;;  %v781_v23 = vld [vmem:[%s3196_s28 + $0x70] sm:$0xff] }
  0x25   : > { %2289 = vmatprep.mubr.msk.f32.mxu0 %vm798_vm0, %v766_v12  ;;  %v780_v21 = vld [vmem:[%s3196_s28 + $0x68] sm:$0xff]  ;;  %v782_v24 = vld [vmem:[%s3196_s28 + $0x78] sm:$0xff]  ;;  %v783_v26 = vld [vmem:[%s3196_s28 + $0x80] sm:$0xff] }
  0x26   : > { %v2506_v22 = vpack.c.bf16 %v780_v21, %v779_v20  ;;  %v2509_v25 = vpack.c.bf16 %v782_v24, %v781_v23  ;;  %v784_v27 = vld [vmem:[%s3196_s28 + $0x88] sm:$0xff]  ;;  %v785_v29 = vld [vmem:[%s3196_s28 + $0x90] sm:$0xff]  ;;  %v786_v30 = vld [vmem:[%s3196_s28 + $0x98] sm:$0xff] }
  0x27   : > { %2492 = vmatpush1.bf16.msra.mxu0 %v2491_v6  ;;  %v2512_v28 = vpack.c.bf16 %v784_v27, %v783_v26  ;;  %v2515_v31 = vpack.c.bf16 %v786_v30, %v785_v29  ;;  %v787_v32 = vld [vmem:[%s3196_s28 + $0xa0] sm:$0xff]  ;;  %v788_v33 = vld [vmem:[%s3196_s28 + $0xa8] sm:$0xff]  ;;  %v789_v35 = vld [vmem:[%s3196_s28 + $0xb0] sm:$0xff] }
  0x28   : > { %2493 = vmatprep.subr.bf16.mxu0 %v2673_v3  ;;  %v2518_v34 = vpack.c.bf16 %v788_v33, %v787_v32  ;;  %v790_v36 = vld [vmem:[%s3196_s28 + $0xb8] sm:$0xff]  ;;  %v765_v38 = vld [vmem:[%s3197_s18] sm:$0xff] }
  0x29   : > { %v2521_v37 = vpack.c.bf16 %v790_v36, %v789_v35  ;;  %v873_v40 = vld [vmem:[%s3198_s1] sm:$0x1] }
  0x2a   : > { %v874_v41 = vadd.f32 %v873_v40, %v872_v39  ;;  %v2288_v43 = vld [vmem:[%s3199_s24] ss:$0 sm:$0xff] }
  0x2b   : > { %2495 = vmatpush1.bf16.msra.mxu0 %v2494_v9 }
  0x2c   : > { %2496 = vmatprep.subr.bf16.mxu0 %v2673_v3  ;;  %876 = vst.msk [vmem:[#allocation2] sm:$0x1] %vm875_vm1, %v874_v41  ;;  %885 = vst.msk [vmem:[#allocation2 + $0x8] sm:$0x1] %vm875_vm1, %v874_v41 }
  0x2f   : > { %2498 = vmatpush1.bf16.msra.mxu0 %v2497_v13 }
  0x30   : > { %2499 = vmatprep.subr.bf16.mxu0 %v2673_v3 }
  0x33   : > { %2501 = vmatpush1.bf16.msra.mxu0 %v2500_v16 }
  0x34   : > { %2502 = vmatprep.subr.bf16.mxu0 %v2673_v3 }
  0x37   : > { %2504 = vmatpush1.bf16.msra.mxu0 %v2503_v19 }
  0x38   : > { %2505 = vmatprep.subr.bf16.mxu0 %v2673_v3 }
  0x3b   : > { %2507 = vmatpush1.bf16.msra.mxu0 %v2506_v22 }
  0x3c   : > { %2508 = vmatprep.subr.bf16.mxu0 %v2673_v3 }
  0x3f   : > { %2510 = vmatpush1.bf16.msra.mxu0 %v2509_v25 }
  0x40   : > { %2511 = vmatprep.subr.bf16.mxu0 %v2673_v3 }
  0x43   : > { %2513 = vmatpush1.bf16.msra.mxu0 %v2512_v28 }
  0x44   : > { %2514 = vmatprep.subr.bf16.mxu0 %v2673_v3 }
  0x47   : > { %2516 = vmatpush1.bf16.msra.mxu0 %v2515_v31 }
  0x48   : > { %2517 = vmatprep.subr.bf16.mxu0 %v2673_v3 }
  0x4b   : > { %2519 = vmatpush1.bf16.msra.mxu0 %v2518_v34 }
  0x4c   : > { %2520 = vmatprep.subr.bf16.mxu0 %v2673_v3 }
  0x4f   : > { %2522 = vmatpush1.bf16.msra.mxu0 %v2521_v37 }
  0x52   : > { %867 = vmatmul.mubr.f32.vlgmr.msra.gmra.mrb[0].mxu0 %v765_v38 }
 0x125   : > { %v868_v46 = vpop.f32.mrb[0].mxu0 }
 0x126   : > { %v869_v47 = vadd.f32 %v2288_v43, %v868_v46  ;;  %v870_v48 = vpop.f32.mrb[1].mxu0 }
 0x128   : > { %v880_v49 = vadd.f32 %v878_v44, %v869_v47  ;;  %v888_v50 = vadd.f32 %v886_v45, %v869_v47 }
 0x12a   : > { %882 = vst.msk [vmem:[#allocation2 + $0x1] sm:$0xf] %vm881_vm3, %v880_v49 }
 0x12b   : > { %890 = vst.msk [vmem:[#allocation2 + $0x5] sm:$0xf0] %vm889_vm4, %v888_v50 }
 0x12c PF: > { %vm896_vm5 = vcmask 261120   ;;  %v940_v1 = vld [vmem:[%s2813_s21] sm:$0xff]  ;;  %v941_v2 = vld [vmem:[%s2813_s21 + $0x8] sm:$0xff]  ;;  %v942_v3 = vld [vmem:[%s2813_s21 + $0x10] sm:$0xff]  ;;  %s3200_s9 = scalar_lea.vmem %s3163_s5, %s2795_s20  ;;  %s3201_s29 = scalar_lea.vmem %s3164_s6, %s2795_s20  ;;  %v2675_v23 = vmov 0.0   ;;  %vm2676_vm6 = vmmov 0   ;;  %v1347_v35 = vlaneseq }
 0x12d   : > { %v2523_v4 = vpack.c.bf16 %v941_v2, %v940_v1  ;;  %v943_v5 = vld [vmem:[%s2813_s21 + $0x18] sm:$0xff]  ;;  %v2290_v14 = vld [vmem:[%s3200_s9] ss:$0 sm:$0xff]  ;;  %2400 = vmatprep.subr.mxu0 %v2675_v23  ;;  %2402 = vmatprep.mubr.msk.f32.mxu0 %vm2676_vm6, %v2675_v23  ;;  %s3202_s19 = scalar_lea.vmem %s3166_s8, %s2795_s20  ;;  %s2677_s22 = smov 112   ;;  %vm1040_vm7 = vcmask 130048   ;;  %vm1356_vm9 = vcmask 64512  }
 0x12e   : > { %v2527_v6 = vpack.c.bf16 %v943_v5, %v942_v3  ;;  %v2291_v16 = vld [vmem:[%s3201_s29] ss:$0 sm:$0xff]  ;;  %s2678_s24 = smov 96   ;;  %v1348_v36 = vand.u32 127, %v1347_v35  ;;  %s2679_s23 = smov 64  }
 0x12f   : > { %2524 = vmatprep.subr.bf16.mxu1 %v2523_v4  ;;  %v2292_v24 = vld [vmem:[%s3202_s19] ss:$0 sm:$0xff]  ;;  %s3203_s26 = sld [smem:[#allocation7_spill]]  ;;  %s2680_s9 = smov 16  }
 0x130   : > { %2526 = vmatpush3.bf16.msra.mxu1 %v2523_v4  ;;  %vm1349_vm8 = vcmp.lt.s32.totalorder %v1348_v36, 5  ;;  %s3204_s29 = scalar_lea.vmem %s3168_s10, %s2795_s20  ;;  %p2316_p5 = scmp.ne.s32.totalorder %s2789_s30, 1 }
 0x131   : > { %v2939_v51 = vld [vmem:[#allocation2] sm:$0xff]  ;;  %2528 = vmatprep.subr.bf16.mxu1 %v2527_v6  ;;  %s3207_s25 = sld [smem:[#allocation15_spill]] (!%p2316_p5)  ;;  %vm2115_vm10 = vcmask (!%p2316_p5), 258049  }
 0x132   : > { %v2941_v52 = vld [vmem:[#allocation2 + $0x8] sm:$0xff]  ;;  %v897_v53 = vsel %vm896_vm5, %v2939_v51, 0.0 }
 0x133   : > { %898 = vadd.xlane.f32.xlu0 %v897_v53  ;;  %v900_v54 = vsel %vm896_vm5, %v2941_v52, 0.0 }
 0x134   : > { %2530 = vmatpush3.bf16.msra.mxu1 %v2527_v6 }
 0x135   : > { %2390 = vmatprep.subr.mxu1 %v2675_v23  ;;  %v1717_v35 = vld [vmem:[%s3203_s26 + $0x10] sm:$0xff]  ;;  %v1718_v36 = vld [vmem:[%s3203_s26 + $0x18] sm:$0xff] }
 0x137   : > { %901 = vadd.xlane.f32.xlu0 %v900_v54 }
 0x1c0   : > { %v899_v55 = vpop.xlane.xlu0 %898 }
 0x1c1   : > { %v904_v56 = vmul.f32 0.03125, %v899_v55 }
 0x1c3   : > { %v906_v57 = vsub.f32 %v2939_v51, %v904_v56 }
 0x1c4   : > { %v902_v58 = vpop.xlane.xlu0 %901 }
 0x1c5   : > { %v905_v59 = vmul.f32 0.03125, %v902_v58  ;;  %v908_v60 = vmul.f32 %v906_v57, %v906_v57 }
 0x1c7   : > { %v907_v61 = vsub.f32 %v2941_v52, %v905_v59  ;;  %v910_v62 = vsel %vm896_vm5, %v908_v60, 0.0 }
 0x1c8   : > { %911 = vadd.xlane.f32.xlu1 %v910_v62 }
 0x1c9   : > { %v909_v63 = vmul.f32 %v907_v61, %v907_v61 }
 0x1cb   : > { %v913_v0 = vsel %vm896_vm5, %v909_v63, 0.0 }
 0x1cc   : > { %914 = vadd.xlane.f32.xlu1 %v913_v0 }
 0x255   : > { %v912_v7 = vpop.xlane.xlu1 %911 }
 0x256   : > { %v916_v8 = vmul.f32 0.03125, %v912_v7 }
 0x258   : > { %v918_v9 = vadd.f32 1e-06, %v916_v8 }
 0x259   : > { %v915_v10 = vpop.xlane.xlu1 %914 }
 0x25a   : > { %2603 = vrsqrt.f32 %v918_v9  ;;  %v917_v11 = vmul.f32 0.03125, %v915_v10 }
 0x25c   : > { %v919_v12 = vadd.f32 1e-06, %v917_v11 }
 0x25e   : > { %2605 = vrsqrt.f32 %v919_v12 }
 0x264   : > { %v2604_v13 = vpop.eup %2603 }
 0x265   : > { %v922_v15 = vmul.f32 %v2604_v13, %v906_v57 }
 0x267   : > { %v930_v17 = vmul.f32 %v2290_v14, %v922_v15 }
 0x268   : > { %v2606_v18 = vpop.eup %2605 }
 0x269   : > { %v923_v19 = vmul.f32 %v2606_v18, %v907_v61  ;;  %v938_v20 = vadd.f32 %v2291_v16, %v930_v17 }
 0x26b   : > { %v931_v21 = vmul.f32 %v2290_v14, %v923_v19  ;;  %2387 = vmatprep.mubr.msk.f32.mxu1 %vm896_vm5, %v938_v20 }
 0x26d   : > { %v939_v22 = vadd.f32 %v2291_v16, %v931_v21 }
 0x26f   : > { %2388 = vmatmul.mubr.msk.f32.vlgmr.msra.gmra.mrb[0].mxu1 %vm896_vm5, %v939_v22 }
 0x270   : > { %2392 = vmatprep.mubr.msk.f32.mxu1 %vm2676_vm6, %v2675_v23 }
 0x342   : > { %v2389_v25 = vpop.f32.mrb[0].mxu1 }
 0x343   : > { %v2978_v26 = vadd.f32 %v2389_v25, %v2292_v24  ;;  %v1023_v27 = vpop.f32.mrb[1].mxu1 }
 0x344   : > { %v2980_v28 = vadd.f32 %v2292_v24, %v1023_v27 }
 0x345   : > { %1036 = vrot.lane.b32.xlu1 %v2978_v26, %s2677_s22 }
 0x346   : > { %1034 = vrot.lane.b32.xlu0 %v2980_v28, %s2677_s22  ;;  %s3205_s22 = scalar_lea.vmem %s3172_s14, %s2795_s20 }
 0x349   : > { %1038 = vrot.lane.b32.xlu1 %v2980_v28, %s2678_s24 }
 0x34d   : > { %1115 = vrot.lane.b32.xlu1 %v2978_v26, %s2678_s24 }
 0x3b7   : > { %v2986_v29 = vpop.permute.xlu1 %1036 }
 0x3b8   : > { %1267 = vrot.lane.b32.xlu1 %v2986_v29, %s2678_s24  ;;  %v2989_v30 = vpop.permute.xlu0 %1034 }
 0x3b9   : > { %1191 = vrot.lane.b32.xlu0 %v2989_v30, %s2678_s24 }
 0x3bb   : > { %v1039_v31 = vpop.permute.xlu1 %1038 }
 0x3bc   : > { %2391 = vmatpush3.xpose.msk.msra.mxu1 %vm1040_vm7, %v1039_v31 }
 0x3bd   : > { %2395 = vmatprep.subr.mxu1 %v2675_v23 }
 0x3bf   : > { %2393 = vmatmul.mubr.msk.f32.vlgmr.msra.gmra.mrb[2].mxu1 %vm1040_vm7, %v2980_v28  ;;  %v1116_v32 = vpop.permute.xlu1 %1115 }
 0x3c0   : > { %2396 = vmatpush3.xpose.msk.msra.mxu1 %vm1040_vm7, %v1116_v32  ;;  %2397 = vmatprep.mubr.msk.f32.mxu1 %vm2676_vm6, %v2675_v23  ;;  %v1715_v32 = vld [vmem:[%s3203_s26] sm:$0xff] }
 0x3c1   : > { %2405 = vmatprep.subr.mxu1 %v2675_v23 }
 0x3c3   : > { %2398 = vmatmul.mubr.msk.f32.vlgmr.msra.gmra.mrb[4].mxu1 %vm1040_vm7, %v2978_v26 }
 0x3c4   : > { %2407 = vmatprep.mubr.msk.f32.mxu1 %vm2676_vm6, %v2675_v23 }
 0x42a   : > { %v1268_v33 = vpop.permute.xlu1 %1267 }
 0x42b   : > { %2406 = vmatpush3.xpose.msk.msra.mxu1 %vm1040_vm7, %v1268_v33  ;;  %v1192_v34 = vpop.permute.xlu0 %1191  ;;  %v1716_v33 = vld [vmem:[%s3203_s26 + $0x8] sm:$0xff]  ;;  %s3206_s26 = sld [smem:[#allocation14_spill]] (!%p2316_p5) }
 0x42c   : > { %2401 = vmatpush3.xpose.msk.msra.mxu0 %vm1040_vm7, %v1192_v34  ;;  %2415 = vmatprep.subr.mxu1 %v2675_v23  ;;  %v2531_v34 = vpack.c.bf16 %v1716_v33, %v1715_v32  ;;  %v1967_v33 = vld [vmem:[%s2845_s2 + $0x20] sm:$0xff] }
 0x42d   : > { %2410 = vmatprep.subr.mxu0 %v2675_v23 }
 0x42e   : > { %2408 = vmatmul.mubr.msk.f32.vlgmr.msra.gmra.mrb[6].mxu1 %vm1040_vm7, %v2986_v29 }
 0x42f   : > { %2403 = vmatmul.mubr.msk.f32.vlgmr.msra.gmra.mrb[0].mxu0 %vm1040_vm7, %v2989_v30  ;;  %2417 = vmatprep.mubr.msk.f32.mxu1 %vm2676_vm6, %v2675_v23 }
 0x430   : > { %2412 = vmatprep.mubr.msk.f32.mxu0 %vm2676_vm6, %v2675_v23 }
 0x492   : > { %v1111_v37 = vpop.f32.mrb[2].mxu1 }
 0x493   : > { %v1343_v38 = vmul.f32 0.25, %v1111_v37  ;;  %v2394_v39 = vpop.f32.mrb[3].mxu1 }
 0x495   : > { %v1352_v40 = vsel %vm1349_vm8, %v1343_v38, -1e+30 }
 0x496   : > { %v1187_v41 = vpop.f32.mrb[4].mxu1  ;;  %v1357_v42 = vsel %vm1356_vm9, %v1352_v40, -inf }
 0x497   : > { %v1344_v43 = vmul.f32 0.25, %v1187_v41  ;;  %v2399_v44 = vpop.f32.mrb[5].mxu1  ;;  %1358 = vmax.xlane.f32.xlu0 %v1357_v42 }
 0x499   : > { %v1353_v45 = vsel %vm1349_vm8, %v1344_v43, -1e+30 }
 0x49a   : > { %v1360_v46 = vsel %vm1356_vm9, %v1353_v45, -inf }
 0x49b   : > { %1361 = vmax.xlane.f32.xlu1 %v1360_v46 }
 0x501   : > { %v1339_v47 = vpop.f32.mrb[6].mxu1 }
 0x502   : > { %v1263_v48 = vpop.f32.mrb[0].mxu0  ;;  %v2409_v49 = vpop.f32.mrb[7].mxu1  ;;  %v1346_v50 = vmul.f32 0.25, %v1339_v47 }
 0x503   : > { %v1345_v53 = vmul.f32 0.25, %v1263_v48  ;;  %v2404_v54 = vpop.f32.mrb[1].mxu0  ;;  %v2307_v49 = vld [vmem:[%s3204_s29] ss:$0 sm:$0xff] }
 0x504   : > { %v1355_v57 = vsel %vm1349_vm8, %v1346_v50, -1e+30 }
 0x505   : > { %v1354_v55 = vsel %vm1349_vm8, %v1345_v53, -1e+30  ;;  %v1366_v58 = vsel %vm1356_vm9, %v1355_v57, -inf }
 0x506   : > { %v1363_v56 = vsel %vm1356_vm9, %v1354_v55, -inf }
 0x507   : > { %1364 = vmax.xlane.f32.xlu0 %v1363_v56 }
 0x50b   : > { %1367 = vmax.xlane.f32.xlu0 %v1366_v58 }
 0x524   : > { %v1359_v59 = vpop.xlane.xlu0 %1358 }
 0x525   : > { %v1369_v60 = vsub.f32 %v1352_v40, %v1359_v59 }
 0x527   : > { %v1373_v61 = vmul.f32 1.442695, %v1369_v60 }
 0x528   : > { %v1362_v62 = vpop.xlane.xlu1 %1361 }
 0x529   : > { %2607 = vpow2.f32 %v1373_v61  ;;  %v1370_v63 = vsub.f32 %v1353_v45, %v1362_v62 }
 0x52b   : > { %v1375_v0 = vmul.f32 1.442695, %v1370_v63 }
 0x52d   : > { %2609 = vpow2.f32 %v1375_v0 }
 0x533   : > { %v2608_v1 = vpop.eup %2607 }
 0x534   : > { %v1381_v2 = vsel %vm1356_vm9, %v2608_v1, 0.0 }
 0x535   : > { %1382 = vadd.xlane.f32.xlu0 %v1381_v2 }
 0x537   : > { %v2610_v3 = vpop.eup %2609 }
 0x538   : > { %v1384_v4 = vsel %vm1356_vm9, %v2610_v3, 0.0 }
 0x539   : > { %1385 = vadd.xlane.f32.xlu1 %v1384_v4  ;;  %v1853_v4 = vld [vmem:[%s2835_s7] sm:$0xff] }
 0x594   : > { %v1365_v5 = vpop.xlane.xlu0 %1364 }
 0x595   : > { %v1371_v6 = vsub.f32 %v1354_v55, %v1365_v5  ;;  %v1854_v5 = vld [vmem:[%s2835_s7 + $0x8] sm:$0xff] }
 0x597   : > { %v1377_v7 = vmul.f32 1.442695, %v1371_v6  ;;  %v2539_v6 = vpack.c.bf16 %v1854_v5, %v1853_v4 }
 0x598   : > { %v1368_v8 = vpop.xlane.xlu0 %1367 }
 0x599   : > { %2611 = vpow2.f32 %v1377_v7  ;;  %v1372_v9 = vsub.f32 %v1355_v57, %v1368_v8  ;;  %v1855_v7 = vld [vmem:[%s2835_s7 + $0x10] sm:$0xff]  ;;  %v1856_v8 = vld [vmem:[%s2835_s7 + $0x18] sm:$0xff] }
 0x59b   : > { %v1379_v10 = vmul.f32 1.442695, %v1372_v9  ;;  %v2543_v9 = vpack.c.bf16 %v1856_v8, %v1855_v7 }
 0x59d   : > { %2613 = vpow2.f32 %v1379_v10 }
 0x5a3   : > { %v2612_v11 = vpop.eup %2611 }
 0x5a4   : > { %v1387_v12 = vsel %vm1356_vm9, %v2612_v11, 0.0 }
 0x5a5   : > { %1388 = vadd.xlane.f32.xlu0 %v1387_v12 }
 0x5a7   : > { %v2614_v13 = vpop.eup %2613 }
 0x5a8   : > { %v1390_v14 = vsel %vm1356_vm9, %v2614_v13, 0.0 }
 0x5a9   : > { %1391 = vadd.xlane.f32.xlu1 %v1390_v14 }
 0x5ba   : > { %1477 = vrot.lane.b32.xlu1 %v2978_v26, %s2679_s23 }
 0x5bb   : > { %1401 = vrot.lane.b32.xlu0 %v2980_v28, %s2679_s23 }
 0x5be   : > { %1553 = vrot.lane.b32.xlu1 %v2989_v30, %s2679_s23 }
 0x5c2   : > { %1629 = vrot.lane.b32.xlu1 %v2986_v29, %s2679_s23  ;;  %v1383_v15 = vpop.xlane.xlu0 %1382 }
 0x5c3   : > { %2615 = vrcp.f32 %v1383_v15 }
 0x5c6   : > { %v1386_v16 = vpop.xlane.xlu1 %1385 }
 0x5c7   : > { %2617 = vrcp.f32 %v1386_v16 }
 0x5cd   : > { %v2616_v18 = vpop.eup %2615 }
 0x5ce   : > { %v1397_v19 = vmul.f32 %v2616_v18, %v2608_v1 }
 0x5d1   : > { %v2618_v22 = vpop.eup %2617 }
 0x5d2   : > { %v1398_v24 = vmul.f32 %v2618_v22, %v2610_v3 }
 0x632   : > { %v1389_v17 = vpop.xlane.xlu0 %1388 }
 0x633   : > { %2619 = vrcp.f32 %v1389_v17  ;;  %v2310_v17 = vld [vmem:[%s741_s17] ss:$0 sm:$0xff] }
 0x636   : > { %v1392_v20 = vpop.xlane.xlu1 %1391  ;;  %v1402_v21 = vpop.permute.xlu0 %1401 }
 0x637   : > { %2621 = vrcp.f32 %v1392_v20  ;;  %2411 = vmatpush3.msra.mxu0 %v1402_v21 }
 0x638   : > { %2413 = vmatmul.mubr.msk.f32.vlgmr.msra.gmra.mrb[2].mxu0 %vm1356_vm9, %v1397_v19  ;;  %2420 = vmatprep.subr.mxu0 %v2675_v23  ;;  %v2311_v19 = vld [vmem:[%s744_s27] ss:$0 sm:$0xff] }
 0x639   : > { %2422 = vmatprep.mubr.msk.f32.mxu0 %vm2676_vm6, %v2675_v23 }
 0x63a   : > { %v1478_v25 = vpop.permute.xlu1 %1477 }
 0x63b   : > { %2416 = vmatpush3.msra.mxu1 %v1478_v25 }
 0x63c   : > { %2418 = vmatmul.mubr.msk.f32.vlgmr.msra.gmra.mrb[8].mxu1 %vm1356_vm9, %v1398_v24  ;;  %2425 = vmatprep.subr.mxu1 %v2675_v23 }
 0x63d   : > { %v2620_v26 = vpop.eup %2619  ;;  %2427 = vmatprep.mubr.msk.f32.mxu1 %vm2676_vm6, %v2675_v23  ;;  %v2535_v23 = vpack.c.bf16 %v1718_v36, %v1717_v35  ;;  %v1969_v36 = vld [vmem:[%s2845_s2 + $0x30] sm:$0xff] }
 0x63e   : > { %v1399_v27 = vmul.f32 %v2620_v26, %v2612_v11  ;;  %v1554_v28 = vpop.permute.xlu1 %1553 }
 0x63f   : > { %2421 = vmatpush3.msra.mxu0 %v1554_v28  ;;  %v1964_v28 = vld [vmem:[%s2845_s2 + $0x8] sm:$0xff] }
 0x640   : > { %2423 = vmatmul.mubr.msk.f32.vlgmr.msra.gmra.mrb[4].mxu0 %vm1356_vm9, %v1399_v27  ;;  %v1963_v27 = vld [vmem:[%s2845_s2] sm:$0xff] }
 0x641   : > { %v2622_v29 = vpop.eup %2621 }
 0x642   : > { %v1400_v30 = vmul.f32 %v2622_v29, %v2614_v13  ;;  %v1630_v31 = vpop.permute.xlu1 %1629  ;;  %v2547_v29 = vpack.c.bf16 %v1964_v28, %v1963_v27 }
 0x643   : > { %2426 = vmatpush3.msra.mxu1 %v1630_v31  ;;  %v1966_v31 = vld [vmem:[%s2845_s2 + $0x18] sm:$0xff] }
 0x644   : > { %2428 = vmatmul.mubr.msk.f32.vlgmr.msra.gmra.mrb[10].mxu1 %vm1356_vm9, %v1400_v30  ;;  %2532 = vmatprep.subr.bf16.mxu1 %v2531_v34  ;;  %v1965_v30 = vld [vmem:[%s2845_s2 + $0x10] sm:$0xff] }
 0x645   : > { %2534 = vmatpush3.bf16.msra.mxu1 %v2531_v34  ;;  %2548 = vmatprep.subr.bf16.mxu0 %v2547_v29  ;;  %v2551_v32 = vpack.c.bf16 %v1966_v31, %v1965_v30  ;;  %v1968_v34 = vld [vmem:[%s2845_s2 + $0x28] sm:$0xff] }
 0x646   : > { %2536 = vmatprep.subr.bf16.mxu1 %v2535_v23  ;;  %2550 = vmatpush3.bf16.msra.mxu0 %v2547_v29  ;;  %v2555_v35 = vpack.c.bf16 %v1968_v34, %v1967_v33 }
 0x647   : > { %2552 = vmatprep.subr.bf16.mxu0 %v2551_v32 }
 0x649   : > { %2538 = vmatpush3.bf16.msra.mxu1 %v2535_v23  ;;  %v1970_v23 = vld [vmem:[%s2845_s2 + $0x38] sm:$0xff] }
 0x64a   : > { %2540 = vmatprep.subr.bf16.mxu1 %v2539_v6  ;;  %2554 = vmatpush3.bf16.msra.mxu0 %v2551_v32 }
 0x64b   : > { %2556 = vmatprep.subr.bf16.mxu0 %v2555_v35 }
 0x64e   : > { %2558 = vmatpush3.bf16.msra.mxu0 %v2555_v35 }
 0x70b   : > { %v1473_v37 = vpop.f32.mrb[2].mxu0 }
 0x70c   : > { %v2414_v38 = vpop.f32.mrb[3].mxu0 }
 0x70d   : > { %v1971_v38 = vld [vmem:[%s2845_s2 + $0x40] sm:$0xff] }
 0x70f   : > { %v1549_v39 = vpop.f32.mrb[8].mxu1 }
 0x710   : > { %v2419_v40 = vpop.f32.mrb[9].mxu1 }
 0x711   : > { %v1973_v40 = vld [vmem:[%s2845_s2 + $0x50] sm:$0xff] }
 0x713   : > { %v1625_v41 = vpop.f32.mrb[4].mxu0 }
 0x714   : > { %1707 = vrot.lane.b32.xlu0 %v1625_v41, %s2680_s9  ;;  %v2424_v42 = vpop.f32.mrb[5].mxu0 }
 0x715   : > { %v1974_v42 = vld [vmem:[%s2845_s2 + $0x58] sm:$0xff] }
 0x717   : > { %v1701_v43 = vpop.f32.mrb[10].mxu1 }
 0x718   : > { %1709 = vrot.lane.b32.xlu1 %v1701_v43, %s2680_s9  ;;  %v2429_v44 = vpop.f32.mrb[11].mxu1  ;;  %v2567_v43 = vpack.c.bf16 %v1974_v42, %v1973_v40 }
 0x719   : > { %v1975_v44 = vld [vmem:[%s2845_s2 + $0x60] sm:$0xff] }
 0x786   : > { %v1708_v45 = vpop.permute.xlu0 %1707 }
 0x787   : > { %v1713_v46 = vsel %vm1040_vm7, %v1473_v37, %v1708_v45  ;;  %v2559_v37 = vpack.c.bf16 %v1970_v23, %v1969_v36  ;;  %v1976_v45 = vld [vmem:[%s2845_s2 + $0x68] sm:$0xff] }
 0x788   : > { %2438 = vmatprep.mubr.msk.f32.mxu1 %vm896_vm5, %v1713_v46  ;;  %v2571_v46 = vpack.c.bf16 %v1976_v45, %v1975_v44 }
 0x789   : > { %2560 = vmatprep.subr.bf16.mxu0 %v2559_v37 }
 0x78a   : > { %v1710_v47 = vpop.permute.xlu1 %1709  ;;  %2562 = vmatpush3.bf16.msra.mxu0 %v2559_v37  ;;  %v2317_v37 = vld [vmem:[%s3206_s26] ss:$0 sm:$0xff] (!%p2316_p5) }
 0x78b   : > { %v1714_v48 = vsel %vm1040_vm7, %v1549_v39, %v1710_v47  ;;  %v1972_v39 = vld [vmem:[%s2845_s2 + $0x48] sm:$0xff]  ;;  %v1977_v47 = vld [vmem:[%s2845_s2 + $0x70] sm:$0xff] }
 0x78c   : > { %2439 = vmatmul.mubr.msk.f32.vlgmr.msra.gmra.mrb[12].mxu1 %vm896_vm5, %v1714_v48  ;;  %v2563_v41 = vpack.c.bf16 %v1972_v39, %v1971_v38  ;;  %v1978_v48 = vld [vmem:[%s2845_s2 + $0x78] sm:$0xff]  ;;  %v2318_v39 = vld [vmem:[%s3207_s25] ss:$0 sm:$0xff] (!%p2316_p5) }
 0x78d   : > { %2542 = vmatpush3.bf16.msra.mxu1 %v2539_v6 }
 0x78e   : > { %2544 = vmatprep.subr.bf16.mxu1 %v2543_v9  ;;  %2564 = vmatprep.subr.bf16.mxu0 %v2563_v41 }
 0x78f   : > { %2566 = vmatpush3.bf16.msra.mxu0 %v2563_v41 }
 0x790   : > { %2568 = vmatprep.subr.bf16.mxu0 %v2567_v43 }
 0x791   : > { %2546 = vmatpush3.bf16.msra.mxu1 %v2543_v9 }
 0x793   : > { %2570 = vmatpush3.bf16.msra.mxu0 %v2567_v43 }
 0x794   : > { %2572 = vmatprep.subr.bf16.mxu0 %v2571_v46 }
 0x797   : > { %2574 = vmatpush3.bf16.msra.mxu0 %v2571_v46 }
 0x85f   : > { %v2440_v50 = vpop.f32.mrb[12].mxu1 }
 0x860   : > { %v1804_v53 = vadd.f32 %v2440_v50, %v2307_v49  ;;  %v1798_v54 = vpop.f32.mrb[13].mxu1  ;;  %v2312_v50 = vld [vmem:[%s3205_s22] ss:$0 sm:$0xff] }
 0x861   : > { %v1799_v55 = vadd.f32 %v2307_v49, %v1798_v54  ;;  %v2575_v49 = vpack.c.bf16 %v1978_v48, %v1977_v47 }
 0x862   : > { %v3060_v56 = vadd.f32 %v1804_v53, %v2941_v52 }
 0x863   : > { %v3063_v57 = vadd.f32 %v1799_v55, %v2939_v51  ;;  %2576 = vmatprep.subr.bf16.mxu0 %v2575_v49 }
 0x864   : > { %v1814_v58 = vsel %vm896_vm5, %v3060_v56, 0.0  ;;  %2578 = vmatpush3.bf16.msra.mxu0 %v2575_v49 }
 0x865   : > { %1815 = vadd.xlane.f32.xlu1 %v1814_v58  ;;  %v1811_v59 = vsel %vm896_vm5, %v3063_v57, 0.0 }
 0x866   : > { %1812 = vadd.xlane.f32.xlu0 %v1811_v59 }
 0x8f2   : > { %v1816_v60 = vpop.xlane.xlu1 %1815 }
 0x8f3   : > { %v1818_v61 = vmul.f32 0.03125, %v1816_v60  ;;  %v1813_v62 = vpop.xlane.xlu0 %1812 }
 0x8f4   : > { %v1817_v52 = vmul.f32 0.03125, %v1813_v62 }
 0x8f5   : > { %v1820_v63 = vsub.f32 %v3060_v56, %v1818_v61 }
 0x8f6   : > { %v1819_v51 = vsub.f32 %v3063_v57, %v1817_v52 }
 0x8f7   : > { %v1822_v2 = vmul.f32 %v1820_v63, %v1820_v63 }
 0x8f8   : > { %v1821_v0 = vmul.f32 %v1819_v51, %v1819_v51 }
 0x8f9   : > { %v1826_v3 = vsel %vm896_vm5, %v1822_v2, 0.0 }
 0x8fa   : > { %v1823_v1 = vsel %vm896_vm5, %v1821_v0, 0.0 }
 0x8fb   : > { %1824 = vadd.xlane.f32.xlu0 %v1823_v1 }
 0x8ff   : > { %1827 = vadd.xlane.f32.xlu0 %v1826_v3 }
 0x988   : > { %v1825_v10 = vpop.xlane.xlu0 %1824 }
 0x989   : > { %v1829_v11 = vmul.f32 0.03125, %v1825_v10 }
 0x98b   : > { %v1831_v12 = vadd.f32 1e-06, %v1829_v11  ;;  %v2315_v11 = vld [vmem:[%s760_s3] ss:$0 sm:$0xff] }
 0x98c   : > { %v1828_v13 = vpop.xlane.xlu0 %1827 }
 0x98d   : > { %2623 = vrsqrt.f32 %v1831_v12  ;;  %v1830_v14 = vmul.f32 0.03125, %v1828_v13 }
 0x98f   : > { %v1832_v15 = vadd.f32 1e-06, %v1830_v14 }
 0x991   : > { %2625 = vrsqrt.f32 %v1832_v15 }
 0x997   : > { %v2624_v16 = vpop.eup %2623 }
 0x998   : > { %v1835_v18 = vmul.f32 %v2624_v16, %v1819_v51 }
 0x99a   : > { %v1843_v20 = vmul.f32 %v2310_v17, %v1835_v18 }
 0x99b   : > { %v2626_v21 = vpop.eup %2625 }
 0x99c   : > { %v1836_v22 = vmul.f32 %v2626_v21, %v1820_v63  ;;  %v1851_v24 = vadd.f32 %v2311_v19, %v1843_v20 }
 0x99e   : > { %v1844_v25 = vmul.f32 %v2310_v17, %v1836_v22  ;;  %2449 = vmatprep.mubr.msk.f32.mxu1 %vm896_vm5, %v1851_v24 }
 0x9a0   : > { %v1852_v26 = vadd.f32 %v2311_v19, %v1844_v25 }
 0x9a2   : > { %2450 = vmatmul.mubr.msk.f32.vlgmr.msra.gmra.mrb[14].mxu1 %vm896_vm5, %v1852_v26 }
 0xa75   : > { %v2451_v53 = vpop.f32.mrb[14].mxu1 }
 0xa76   : > { %v1942_v54 = vadd.f32 %v2451_v53, %v2312_v50  ;;  %v1936_v55 = vpop.f32.mrb[15].mxu1 }
 0xa77   : > { %v1937_v58 = vadd.f32 %v2312_v50, %v1936_v55 }
 0xa78   : > { %v1946_v59 = vmul.f32 %v1942_v54, %v1942_v54 }
 0xa79   : > { %v1945_v60 = vmul.f32 %v1937_v58, %v1937_v58 }
 0xa7a   : > { %v1948_v61 = vmul.f32 %v1946_v59, %v1942_v54 }
 0xa7b   : > { %v1947_v62 = vmul.f32 %v1945_v60, %v1937_v58 }
 0xa7c   : > { %v1950_v52 = vmul.f32 0.044715, %v1948_v61 }
 0xa7d   : > { %v1949_v63 = vmul.f32 0.044715, %v1947_v62 }
 0xa7e   : > { %v1952_v51 = vadd.f32 %v1950_v52, %v1942_v54 }
 0xa7f   : > { %v1951_v0 = vadd.f32 %v1949_v63, %v1937_v58 }
 0xa80   : > { %v1954_v1 = vmul.f32 0.7978846, %v1952_v51 }
 0xa81   : > { %v1953_v2 = vmul.f32 0.7978846, %v1951_v0 }
 0xa82   : > { %2627 = vtanh.f32 %v1954_v1 }
 0xa83   : > { %2629 = vtanh.f32 %v1953_v2 }
 0xa8c   : > { %v2628_v3 = vpop.eup %2627 }
 0xa8d   : > { %v2630_v4 = vpop.eup %2629  ;;  %v1958_v5 = vadd.f32 1.0, %v2628_v3 }
 0xa8e   : > { %v1957_v6 = vadd.f32 1.0, %v2630_v4 }
 0xa8f   : > { %v1960_v7 = vmul.f32 0.5, %v1958_v5 }
 0xa90   : > { %v1959_v8 = vmul.f32 0.5, %v1957_v6 }
 0xa91   : > { %v1962_v10 = vmul.f32 %v1960_v7, %v1942_v54 }
 0xa92   : > { %v1961_v9 = vmul.f32 %v1959_v8, %v1937_v58 }
 0xa94   : > { %2484 = vmatprep.mubr.f32.mxu0 %v1961_v9 }
 0xa95   : > { %2485 = vmatmul.mubr.f32.vlgmr.msra.gmra.mrb[6].mxu0 %v1962_v10 }
 0xb68   : > { %v2486_v12 = vpop.f32.mrb[6].mxu0  ;;  %2068 = sbr.rel (%p2316_p5) target bundleno = 3252 (0xcb4), region = 104 }
 0xb69   : > { %v2058_v13 = vadd.f32 %v2486_v12, %v2315_v11  ;;  %v2052_v14 = vpop.f32.mrb[7].mxu0 }
 0xb6a   : > { %v2053_v15 = vadd.f32 %v2315_v11, %v2052_v14 }
 0xb6b   : > { %v2062_v16 = vadd.f32 %v2058_v13, %v3060_v56 }
 0xb6c   : > { %v2061_v17 = vadd.f32 %v2053_v15, %v3063_v57 }
 0xb6d   : > { %2064 = vst.msk [vmem:[#allocation2 + $0x8] sm:$0xff] %vm896_vm5, %v2062_v16 }
 0xb6e   : > { %2063 = vst.msk [vmem:[#allocation2] sm:$0xff] %vm896_vm5, %v2061_v17 }
 0xb74   : > { %v2070_v19 = vld [vmem:[#allocation2 + $0x8] sm:$0xff] }
 0xb75   : > { %v2069_v18 = vld [vmem:[#allocation2] sm:$0xff]  ;;  %v2076_v21 = vsel %vm896_vm5, %v2070_v19, 0.0 }
 0xb76   : > { %v2073_v20 = vsel %vm896_vm5, %v2069_v18, 0.0 }
 0xb77   : > { %2074 = vadd.xlane.f32.xlu0 %v2073_v20 }
 0xb7b   : > { %2077 = vadd.xlane.f32.xlu0 %v2076_v21 }
 0xc04   : > { %v2075_v22 = vpop.xlane.xlu0 %2074 }
 0xc05   : > { %v2079_v24 = vmul.f32 0.03125, %v2075_v22 }
 0xc07   : > { %v2081_v56 = vsub.f32 %v2069_v18, %v2079_v24 }
 0xc08   : > { %v2078_v25 = vpop.xlane.xlu0 %2077 }
 0xc09   : > { %v2080_v57 = vmul.f32 0.03125, %v2078_v25  ;;  %v2083_v26 = vmul.f32 %v2081_v56, %v2081_v56 }
 0xc0b   : > { %v2082_v27 = vsub.f32 %v2070_v19, %v2080_v57  ;;  %v2085_v28 = vsel %vm896_vm5, %v2083_v26, 0.0 }
 0xc0c   : > { %2086 = vadd.xlane.f32.xlu1 %v2085_v28 }
 0xc0d   : > { %v2084_v29 = vmul.f32 %v2082_v27, %v2082_v27 }
 0xc0f   : > { %v2088_v30 = vsel %vm896_vm5, %v2084_v29, 0.0 }
 0xc10   : > { %2089 = vadd.xlane.f32.xlu1 %v2088_v30 }
 0xc99   : > { %v2087_v31 = vpop.xlane.xlu1 %2086 }
 0xc9a   : > { %v2091_v32 = vmul.f32 0.03125, %v2087_v31 }
 0xc9c   : > { %v2093_v33 = vadd.f32 1e-06, %v2091_v32 }
 0xc9d   : > { %v2090_v34 = vpop.xlane.xlu1 %2089 }
 0xc9e   : > { %2631 = vrsqrt.f32 %v2093_v33  ;;  %v2092_v35 = vmul.f32 0.03125, %v2090_v34 }
 0xca0   : > { %v2094_v36 = vadd.f32 1e-06, %v2092_v35 }
 0xca2   : > { %2633 = vrsqrt.f32 %v2094_v36 }
 0xca8   : > { %v2632_v23 = vpop.eup %2631 }
 0xca9   : > { %v2097_v38 = vmul.f32 %v2632_v23, %v2081_v56 }
 0xcab   : > { %v2105_v40 = vmul.f32 %v2317_v37, %v2097_v38 }
 0xcac   : > { %v2634_v41 = vpop.eup %2633 }
 0xcad   : > { %v2113_v42 = vadd.f32 %v2318_v39, %v2105_v40  ;;  %v2098_v43 = vmul.f32 %v2634_v41, %v2082_v27 }
 0xcaf   : > { %2116 = vst.msk [vmem:[#allocation3 - $0x1] sm:$0x1e] %vm2115_vm10, %v2113_v42  ;;  %v2106_v44 = vmul.f32 %v2317_v37, %v2098_v43 }
 0xcb1   : > { %v2114_v45 = vadd.f32 %v2318_v39, %v2106_v44 }
 0xcb3   : > { %2118 = vst.msk [vmem:[#allocation3 + $0x3] sm:$0x1e] %vm2115_vm10, %v2114_v45 }
 0xcb4 PF: > { %p2583_p6 = scmp.eq.s32.totalorder %s2789_s30, 1  ;;  %s2681_s29 = smov [#allocation3]  }
 0xcb5   : > { %s2125_s0 = sshll.u32 %s2681_s29, 4  ;;  %s2126_s0 = int_to_ptr.vmem [resolvable:$true] %s2125_s0 }
 0xcb6   : > { %s2635_s1 = scalar_lea.vmem %s2126_s0, 128  ;;  %p2642_p10 = scmp.lt.s32.totalorder %s2126_s0, %s2126_s0 }
 0xcb7   : > { %p2636_p7 = scmp.ne.s32.totalorder %s2126_s0, %s2635_s1  ;;  %p2643_p11 = scmp.lt.s32.totalorder %s2635_s1, %s2635_s1 }
 0xcb9   : > { %p2637_p8 = pnand %p2636_p7, %p2583_p6  ;;  %p2644_p12 = por %p2643_p11, %p2642_p10 }
 0xcbb   : > { %p2638_p9 = pneg %p2637_p8 }
 0xcbd   : > { %p2645_p13 = pnand %p2644_p12, %p2638_p9 }
 0xcbf   : > { %2648 = shalt.err (!%p2645_p13)
}
 0xcc0   : > { %s3208_s17 = sld [smem:[#allocation16_spill]] }
 0xcc6   : > { %s2649_s27 = scalar_lea.hbm %s3208_s17, 128 }
 0xcc7   : > { %p2650_p0 = scmp.ne.s32.totalorder %s3208_s17, %s2649_s27  ;;  %p2655_p3 = scmp.lt.u32.totalorder %s2649_s27, %s3208_s17 }
 0xcc9   : > { %p2651_p1 = pnand %p2650_p0, %p2583_p6 }
 0xccb   : > { %p2652_p2 = pneg %p2651_p1 }
 0xccd   : > { %p2657_p4 = pnand %p2655_p3, %p2652_p2 }
 0xccf   : > { %2660 = shalt.err (!%p2657_p4)
}
 0xcd0   : > { %s2682_s3 = smov 4  }
 0xcd1   : > { %2580 = dma.vmem_to_hbm [thread:$0]  (%p2583_p6), %s2126_s0, 128, %s3208_s17, [#allocation4], %s2679_s23, %s2679_s23, %s2682_s3  }
 0xcd2   : > { %2666 = dma.done.wait (%p2583_p6), [#allocation4], 128  }
 0xcd3   : > { %2668 = vsyncadd (%p2583_p6), [#allocation4], 4294967168 }
 0xcd4 PF: > { %s3209_s21 = sld [smem:[#allocation6_spill]] }
 0xcda   : > { %s30_s0 = sadd.s32 1, %s3209_s21  }
 0xcdb   : > { %p27_p5 = scmp.ge.s32.totalorder %s30_s0, 4  }
 0xcdd   :  { %29 = sbr.rel (!%p27_p5) target bundleno = 11 (0xb), region = 165 }
 0xce4   :  { %2141 = vsyncpa [#allocation4], 1 }
 0xce5   :  { %2143 = vsyncpa [#allocation4 + $0x1], 1 }

</bundles_post_ra>
